<compile_context>
chip_gen: v6e
topology: v6e:2x2x1
jax: 0.10.0
libtpu: 0.0.40
codegen_flags: <defaults>
</compile_context>

<pallas_src>
import functools

import jax
import jax.numpy as jnp
from jax import lax
from jax.experimental import pallas as pl
from jax.experimental.pallas import tpu as pltpu


def _round_up(x, m):
    return (x + m - 1) // m * m


# ----------------------------------------------------------------------------
# Kernel factory: one batch element per grid step, fully fused basic block:
#   conv1(3x3, stride) + bn1 + relu -> conv2(3x3, 1) + bn2
#   + shortcut (1x1, stride, + bn  OR  identity) -> relu
# All spatial planes are handled as flat (rows*Wp, C) slabs so every tap is a
# contiguous row-offset slice; M = Ho*Wp and the Wp-Wo garbage columns are
# dropped only at the final store.
# ----------------------------------------------------------------------------
def _make_kernel(stride, Ho, Wo, Wp, Cin, P, has_proj):
    s = stride
    M = Ho * Wp                     # matmul M dim = output rows * padded width
    Hm = Ho + 3                     # mid rows: top pad + Ho + bottom pad + flat slack
    OFF = Wp + 1                    # flat offset of the mid data region (row 1, col 1)
    p_sc = (1 % s) * s + (1 % s)    # shortcut == center tap of the padded input
    o_sc = 1 // s
    sc_start = o_sc * Wp + o_sc

    def taps_matmul(get_tap, w_ref, k_dim):
        # sum_k dot(tap_k, w_k).  Lane-aligned channel counts fuse the three
        # dx-taps of each kernel row into one fat-K dot (fewer VPU adds,
        # better MXU K utilization); otherwise 9 accumulated dots.
        acc = jnp.zeros((M, P), jnp.float32)
        if k_dim % 128 == 0:
            for dy in range(3):
                a = jnp.concatenate([get_tap(dy * 3 + dx) for dx in range(3)],
                                    axis=-1)
                w = w_ref[dy * 3:dy * 3 + 3].reshape(3 * k_dim, P)
                acc = acc + jnp.dot(a, w, preferred_element_type=jnp.float32)
        else:
            for k in range(9):
                acc = acc + jnp.dot(get_tap(k), w_ref[k],
                                    preferred_element_type=jnp.float32)
        return acc

    def kernel(x_ref, w1_ref, w2_ref, *rest):
        if has_proj:
            ws_ref, b1_ref, bo_ref, out_ref, mid_ref = rest
        else:
            b1_ref, bo_ref, out_ref, mid_ref = rest
        cdt = mid_ref.dtype

        # ---- conv1 (+ folded bn1): contiguous flat tap views ----------------
        def conv1_tap(k):
            dy, dx = k // 3, k % 3
            ph = (dy % s) * s + (dx % s)
            start = (dy // s) * Wp + (dx // s)
            return x_ref[0, ph, start:start + M, :]

        acc1 = taps_matmul(conv1_tap, w1_ref, Cin)

        # relu epilogue; zero the garbage columns (j >= Wo of each image row)
        # so the flat store below also writes conv2's zero-padding columns.
        col = lax.broadcasted_iota(jnp.int32, (M, 1), 0) % Wp
        h1 = jnp.where(col < Wo, jnp.maximum(acc1 + b1_ref[...], 0.0), 0.0)

        # ---- stage h1 into the flat mid plane --------------------------------
        # The whole buffer is rewritten every grid step (megacore-safe):
        #   [0, Wp+8)                top padding row + the (1,0) left pad
        #   [OFF, OFF+M)             data rows; the masked garbage supplies the
        #                            right/left padding columns of rows 1..Ho
        #   [(Ho+1)*Wp, (Ho+3)*Wp)   bottom padding row + flat-slice slack row
        mid_ref[0:Wp + 8, :] = jnp.zeros((Wp + 8, P), cdt)
        mid_ref[(Ho + 1) * Wp:(Ho + 3) * Wp, :] = jnp.zeros((2 * Wp, P), cdt)
        mid_ref[OFF:OFF + M, :] = h1.astype(cdt)

        # ---- conv2 (+ folded bn2): contiguous flat taps of the mid plane -----
        def conv2_tap(k):
            dy, dx = k // 3, k % 3
            start = dy * Wp + dx
            return mid_ref[start:start + M, :]

        acc2 = taps_matmul(conv2_tap, w2_ref, P)

        # ---- shortcut (center tap of the padded input) + residual relu -------
        sc_in = x_ref[0, p_sc, sc_start:sc_start + M, :]
        if has_proj:
            sc = jnp.dot(sc_in, ws_ref[...], preferred_element_type=jnp.float32)
        else:
            sc = sc_in.astype(jnp.float32)            # identity: Cin == P

        out = jnp.maximum(acc2 + sc + bo_ref[...], 0.0)
        # One strided slice per block (instead of 18 strided tap copies): drop
        # the garbage columns and store the (Ho, Wo, P) output tile.
        out_ref[0] = out.reshape(Ho, Wp, P)[:, :Wo, :].astype(out_ref.dtype)

    return kernel, Hm


# ----------------------------------------------------------------------------
# One-time parameter prep (BN folding + layout transposes).  Hoisted out of the
# per-forward path: call once per network, reuse for every forward pass.
# ----------------------------------------------------------------------------
def _fold_bn(bn):
    scale = (bn["gamma"] / jnp.sqrt(bn["var"] + bn["eps"])).astype(jnp.float32)
    bias = (bn["beta"] - bn["mean"] * scale).astype(jnp.float32)
    return scale, bias


def fold_block_params(params, *, compute_dtype=jnp.float32):
    P, Cin = params["w1"].shape[0], params["w1"].shape[1]
    s1, b1 = _fold_bn(params["bn1"])
    s2, b2 = _fold_bn(params["bn2"])
    w1 = (jnp.transpose(params["w1"], (2, 3, 1, 0)) * s1).reshape(9, Cin, P)
    w2 = (jnp.transpose(params["w2"], (2, 3, 1, 0)) * s2).reshape(9, P, P)
    folded = dict(w1=w1.astype(compute_dtype), w2=w2.astype(compute_dtype),
                  b1=b1.reshape(1, P))
    if params["ws"] is not None:
        ss, bs = _fold_bn(params["bn_s"])
        ws = jnp.transpose(params["ws"], (2, 3, 1, 0)).reshape(Cin, P) * ss
        folded["ws"] = ws.astype(compute_dtype)
        folded["b_out"] = (b2 + bs).reshape(1, P)
    else:
        folded["ws"] = None
        folded["b_out"] = b2.reshape(1, P)
    return folded


# ----------------------------------------------------------------------------
# NHWC forward (the fast path for chaining blocks).
# ----------------------------------------------------------------------------
@functools.partial(jax.jit, static_argnames=("stride", "compute_dtype"))
def basic_block_partial_nhwc(x_nhwc, folded, *, stride,
                             compute_dtype=jnp.float32):
    N, H, W, Cin = x_nhwc.shape
    P = folded["w1"].shape[2]
    s = stride
    Ho = (H + 2 - 3) // s + 1
    Wo = (W + 2 - 3) // s + 1
    ext = 2 // s                          # extra rows/cols per phase plane
    Hp = Ho + ext + 1                     # +1 slack row for the flat tap views
    Wp = _round_up(Wo + 2, 8)             # flat row width (sublane aligned)

    has_proj = folded["ws"] is not None
    if not has_proj:
        assert Cin == P, "identity shortcut requires in_planes == planes"

    # Zero-pad (conv padding=1 plus filler so every flat tap slice stays inside
    # the plane) and decompose into stride-phase sub-planes so every conv1 tap
    # and the strided 1x1 shortcut is a contiguous flat slice.  Exactly one
    # padded input copy in HBM (no im2col expansion).
    x = x_nhwc.astype(compute_dtype)
    pad_b = s * Hp - H - 1
    pad_r = s * Wp - W - 1
    xp = jnp.pad(x, ((0, 0), (1, pad_b), (1, pad_r), (0, 0)))
    if s == 1:                             # stride 1: no phase transpose needed
        xph = xp.reshape(N, 1, Hp * Wp, Cin)
    else:
        xph = xp.reshape(N, Hp, s, Wp, s, Cin).transpose(0, 2, 4, 1, 3, 5)
        xph = xph.reshape(N, s * s, Hp * Wp, Cin)

    kernel, Hm = _make_kernel(s, Ho, Wo, Wp, Cin, P, has_proj)

    in_specs = [
        pl.BlockSpec((1, s * s, Hp * Wp, Cin), lambda n: (n, 0, 0, 0)),
        pl.BlockSpec((9, Cin, P), lambda n: (0, 0, 0)),
        pl.BlockSpec((9, P, P), lambda n: (0, 0, 0)),
    ]
    args = [xph, folded["w1"], folded["w2"]]
    if has_proj:
        in_specs.append(pl.BlockSpec((Cin, P), lambda n: (0, 0)))
        args.append(folded["ws"])
    in_specs += [pl.BlockSpec((1, P), lambda n: (0, 0)),
                 pl.BlockSpec((1, P), lambda n: (0, 0))]
    args += [folded["b1"], folded["b_out"]]

    # Explicit scoped-VMEM budget from the actual per-step footprint
    # (double-buffered input/output/weights + mid scratch + f32 temporaries).
    isz = jnp.dtype(compute_dtype).itemsize
    in_bytes = s * s * Hp * Wp * Cin * isz
    out_bytes = Ho * Wo * P * 4
    w_bytes = (9 * Cin * P + 9 * P * P + (Cin * P if has_proj else 0)) * isz + 2 * P * 4
    mid_bytes = Hm * Wp * P * isz
    acc_bytes = 3 * Ho * Wp * P * 4
    vmem_est = 2 * (in_bytes + out_bytes + w_bytes) + mid_bytes + acc_bytes
    vmem_limit = int(max(32 << 20, min(96 << 20, vmem_est + (8 << 20))))

    flops = 2 * N * Ho * Wp * P * (9 * Cin + 9 * P + (Cin if has_proj else 0))
    cost = pl.CostEstimate(flops=int(flops), transcendentals=0,
                           bytes_accessed=int(N * (in_bytes + out_bytes) + w_bytes))

    out_nhwc = pl.pallas_call(
        kernel,
        out_shape=jax.ShapeDtypeStruct((N, Ho, Wo, P), jnp.float32),
        grid=(N,),
        in_specs=in_specs,
        out_specs=pl.BlockSpec((1, Ho, Wo, P), lambda n: (n, 0, 0, 0)),
        scratch_shapes=[pltpu.VMEM((Hm * Wp, P), compute_dtype)],
        compiler_params=pltpu.CompilerParams(
            dimension_semantics=("parallel",),
            vmem_limit_bytes=vmem_limit),
        cost_estimate=cost,
    )(*args)
    return out_nhwc


def basic_block_partial(x_nchw, params, stride, *, compute_dtype=jnp.float32):
    """NCHW interface matching the PyTorch module (folds BN per call; for
    multi-block inference use fold_block_params + basic_block_partial_nhwc)."""
    folded = fold_block_params(params, compute_dtype=compute_dtype)
    x_nhwc = jnp.transpose(x_nchw, (0, 2, 3, 1))
    out = basic_block_partial_nhwc(x_nhwc, folded, stride=stride,
                                   compute_dtype=compute_dtype)
    return jnp.transpose(out, (0, 3, 1, 2))


# ----------------------------------------------------------------------------
# Deterministic parameter construction (mirrors the module's __init__ shapes).
# ----------------------------------------------------------------------------
def init_params(key, in_planes, planes, stride):
    ks = jax.random.split(key, 6)

    def make_bn(k):
        k1, k2, k3, k4 = jax.random.split(k, 4)
        return dict(
            gamma=jax.random.uniform(k1, (planes,), minval=0.5, maxval=1.5),
            beta=0.1 * jax.random.normal(k2, (planes,)),
            mean=0.1 * jax.random.normal(k3, (planes,)),
            var=jax.random.uniform(k4, (planes,), minval=0.5, maxval=1.5),
            eps=1e-5,
        )

    p = dict(
        w1=0.2 * jax.random.normal(ks[0], (planes, in_planes, 3, 3)),
        bn1=make_bn(ks[1]),
        w2=0.2 * jax.random.normal(ks[2], (planes, planes, 3, 3)),
        bn2=make_bn(ks[3]),
    )
    if stride != 1 or in_planes != planes:
        p["ws"] = 0.2 * jax.random.normal(ks[4], (planes, in_planes, 1, 1))
        p["bn_s"] = make_bn(ks[5])
    else:
        p["ws"] = None
        p["bn_s"] = None
    return p


# Pure-JAX reference (lax conv) for correctness checking.
def ref_block(x_nchw, params, stride):
    x = jnp.transpose(x_nchw, (0, 2, 3, 1)).astype(jnp.float32)

    def conv(z, w_oihw, s, pad):
        w = jnp.transpose(w_oihw, (2, 3, 1, 0))
        return jax.lax.conv_general_dilated(
            z, w, (s, s), pad, dimension_numbers=("NHWC", "HWIO", "NHWC"))

    def bn(z, b):
        scale = b["gamma"] / jnp.sqrt(b["var"] + b["eps"])
        return z * scale + (b["beta"] - b["mean"] * scale)

    h = jnp.maximum(bn(conv(x, params["w1"], stride, ((1, 1), (1, 1))), params["bn1"]), 0.0)
    h = bn(conv(h, params["w2"], 1, ((1, 1), (1, 1))), params["bn2"])
    if params["ws"] is None:
        sc = x[:, ::stride, ::stride, :]
    else:
        sc = bn(conv(x, params["ws"], stride, ((0, 0), (0, 0))), params["bn_s"])
    out = jnp.maximum(h + sc, 0.0)
    return jnp.transpose(out, (0, 3, 1, 2))


if __name__ == "__main__":
    key = jax.random.PRNGKey(0)

    configs = [
        # (N, in_planes, H, W, planes, stride)
        (2, 4, 16, 16, 8, 2),   # projection shortcut (1x1 conv + bn), stride 2
        (2, 8, 16, 16, 8, 1),   # identity shortcut, stride 1
    ]
    for idx, (N, cin, H, W, planes, stride) in enumerate(configs):
        k_x, k_p = jax.random.split(jax.random.fold_in(key, idx))
        x = jax.random.normal(k_x, (N, cin, H, W), jnp.float32)
        params = init_params(k_p, cin, planes, stride)

        out = jax.block_until_ready(basic_block_partial(x, params, stride))
        ref = ref_block(x, params, stride)

        Ho = (H + 2 - 3) // stride + 1
        Wo = (W + 2 - 3) // stride + 1
        assert out.shape == (N, planes, Ho, Wo), out.shape
        if not bool(jnp.allclose(out, ref, atol=1e-3, rtol=1e-3)):
            err = float(jnp.max(jnp.abs(out - ref)))
            raise AssertionError(
                f"config {idx}: mismatch vs reference, max abs err = {err}")

    print("KERNEL_OK")
</pallas_src>

<mosaic_0001>
module attributes {stable_mosaic.version = 11 : i64} {
  func.func @kernel(%arg0: i32, %arg1: memref<1x4x160x4xf32, #tpu.memory_space<vmem>>, %arg2: memref<9x4x8xf32, #tpu.memory_space<vmem>>, %arg3: memref<9x8x8xf32, #tpu.memory_space<vmem>>, %arg4: memref<4x8xf32, #tpu.memory_space<vmem>>, %arg5: memref<1x8xf32, #tpu.memory_space<vmem>>, %arg6: memref<1x8xf32, #tpu.memory_space<vmem>>, %arg7: memref<1x8x8x8xf32, #tpu.memory_space<vmem>>, %arg8: memref<176x8xf32, #tpu.memory_space<vmem>>) attributes {dimension_semantics = [#tpu.dimension_semantics<parallel>], iteration_bounds = array<i64: 2>, scalar_prefetch = 0 : i64, scratch_operands = 1 : i64, tpu.core_type = #tpu.core_type<tc>, window_params = [{transform_indices = @transform_0, window_bounds = array<i64: 1, 4, 160, 4>}, {pipeline_mode = #tpu.pipeline_mode<synchronous>, transform_indices = @transform_1, window_bounds = array<i64: 9, 4, 8>}, {pipeline_mode = #tpu.pipeline_mode<synchronous>, transform_indices = @transform_2, window_bounds = array<i64: 9, 8, 8>}, {pipeline_mode = #tpu.pipeline_mode<synchronous>, transform_indices = @transform_3, window_bounds = array<i64: 4, 8>}, {pipeline_mode = #tpu.pipeline_mode<synchronous>, transform_indices = @transform_4, window_bounds = array<i64: 1, 8>}, {pipeline_mode = #tpu.pipeline_mode<synchronous>, transform_indices = @transform_5, window_bounds = array<i64: 1, 8>}, {transform_indices = @transform_6, window_bounds = array<i64: 1, 8, 8, 8>}]} {
    %cst = arith.constant 0.000000e+00 : f32
    %0 = vector.broadcast %cst : f32 to vector<128x8xf32>
    %c0 = arith.constant 0 : index
    %c0_0 = arith.constant 0 : index
    %c0_1 = arith.constant 0 : index
    %c0_2 = arith.constant 0 : index
    %1 = vector.load %arg1[%c0, %c0_0, %c0_1, %c0_2] : memref<1x4x160x4xf32, #tpu.memory_space<vmem>>, vector<1x1x128x4xf32>
    %2 = vector.shape_cast %1 : vector<1x1x128x4xf32> to vector<128x4xf32>
    %c0_3 = arith.constant 0 : index
    %c0_4 = arith.constant 0 : index
    %c0_5 = arith.constant 0 : index
    %3 = vector.load %arg2[%c0_3, %c0_4, %c0_5] : memref<9x4x8xf32, #tpu.memory_space<vmem>>, vector<1x4x8xf32>
    %4 = vector.shape_cast %3 : vector<1x4x8xf32> to vector<4x8xf32>
    %cst_6 = arith.constant dense<0.000000e+00> : vector<128x8xf32>
    %5 = tpu.matmul %2, %4, %cst_6 {dimension_numbers = #tpu.dot_dimension_numbers<[1], [0], [0], [1], [0, 0, 1, 1], [], []>} : vector<128x4xf32>, vector<4x8xf32>, vector<128x8xf32> -> vector<128x8xf32>
    %6 = arith.addf %0, %5 : vector<128x8xf32>
    %c0_7 = arith.constant 0 : index
    %c1 = arith.constant 1 : index
    %c0_8 = arith.constant 0 : index
    %c0_9 = arith.constant 0 : index
    %7 = vector.load %arg1[%c0_7, %c1, %c0_8, %c0_9] : memref<1x4x160x4xf32, #tpu.memory_space<vmem>>, vector<1x1x128x4xf32>
    %8 = vector.shape_cast %7 : vector<1x1x128x4xf32> to vector<128x4xf32>
    %c1_10 = arith.constant 1 : index
    %c0_11 = arith.constant 0 : index
    %c0_12 = arith.constant 0 : index
    %9 = vector.load %arg2[%c1_10, %c0_11, %c0_12] : memref<9x4x8xf32, #tpu.memory_space<vmem>>, vector<1x4x8xf32>
    %10 = vector.shape_cast %9 : vector<1x4x8xf32> to vector<4x8xf32>
    %cst_13 = arith.constant dense<0.000000e+00> : vector<128x8xf32>
    %11 = tpu.matmul %8, %10, %cst_13 {dimension_numbers = #tpu.dot_dimension_numbers<[1], [0], [0], [1], [0, 0, 1, 1], [], []>} : vector<128x4xf32>, vector<4x8xf32>, vector<128x8xf32> -> vector<128x8xf32>
    %12 = arith.addf %6, %11 : vector<128x8xf32>
    %c0_14 = arith.constant 0 : index
    %c0_15 = arith.constant 0 : index
    %c1_16 = arith.constant 1 : index
    %c0_17 = arith.constant 0 : index
    %13 = vector.load %arg1[%c0_14, %c0_15, %c1_16, %c0_17] : memref<1x4x160x4xf32, #tpu.memory_space<vmem>>, vector<1x1x128x4xf32>
    %14 = vector.shape_cast %13 : vector<1x1x128x4xf32> to vector<128x4xf32>
    %c2 = arith.constant 2 : index
    %c0_18 = arith.constant 0 : index
    %c0_19 = arith.constant 0 : index
    %15 = vector.load %arg2[%c2, %c0_18, %c0_19] : memref<9x4x8xf32, #tpu.memory_space<vmem>>, vector<1x4x8xf32>
    %16 = vector.shape_cast %15 : vector<1x4x8xf32> to vector<4x8xf32>
    %cst_20 = arith.constant dense<0.000000e+00> : vector<128x8xf32>
    %17 = tpu.matmul %14, %16, %cst_20 {dimension_numbers = #tpu.dot_dimension_numbers<[1], [0], [0], [1], [0, 0, 1, 1], [], []>} : vector<128x4xf32>, vector<4x8xf32>, vector<128x8xf32> -> vector<128x8xf32>
    %18 = arith.addf %12, %17 : vector<128x8xf32>
    %c0_21 = arith.constant 0 : index
    %c2_22 = arith.constant 2 : index
    %c0_23 = arith.constant 0 : index
    %c0_24 = arith.constant 0 : index
    %19 = vector.load %arg1[%c0_21, %c2_22, %c0_23, %c0_24] : memref<1x4x160x4xf32, #tpu.memory_space<vmem>>, vector<1x1x128x4xf32>
    %20 = vector.shape_cast %19 : vector<1x1x128x4xf32> to vector<128x4xf32>
    %c3 = arith.constant 3 : index
    %c0_25 = arith.constant 0 : index
    %c0_26 = arith.constant 0 : index
    %21 = vector.load %arg2[%c3, %c0_25, %c0_26] : memref<9x4x8xf32, #tpu.memory_space<vmem>>, vector<1x4x8xf32>
    %22 = vector.shape_cast %21 : vector<1x4x8xf32> to vector<4x8xf32>
    %cst_27 = arith.constant dense<0.000000e+00> : vector<128x8xf32>
    %23 = tpu.matmul %20, %22, %cst_27 {dimension_numbers = #tpu.dot_dimension_numbers<[1], [0], [0], [1], [0, 0, 1, 1], [], []>} : vector<128x4xf32>, vector<4x8xf32>, vector<128x8xf32> -> vector<128x8xf32>
    %24 = arith.addf %18, %23 : vector<128x8xf32>
    %c0_28 = arith.constant 0 : index
    %c3_29 = arith.constant 3 : index
    %c0_30 = arith.constant 0 : index
    %c0_31 = arith.constant 0 : index
    %25 = vector.load %arg1[%c0_28, %c3_29, %c0_30, %c0_31] : memref<1x4x160x4xf32, #tpu.memory_space<vmem>>, vector<1x1x128x4xf32>
    %26 = vector.shape_cast %25 : vector<1x1x128x4xf32> to vector<128x4xf32>
    %c4 = arith.constant 4 : index
    %c0_32 = arith.constant 0 : index
    %c0_33 = arith.constant 0 : index
    %27 = vector.load %arg2[%c4, %c0_32, %c0_33] : memref<9x4x8xf32, #tpu.memory_space<vmem>>, vector<1x4x8xf32>
    %28 = vector.shape_cast %27 : vector<1x4x8xf32> to vector<4x8xf32>
    %cst_34 = arith.constant dense<0.000000e+00> : vector<128x8xf32>
    %29 = tpu.matmul %26, %28, %cst_34 {dimension_numbers = #tpu.dot_dimension_numbers<[1], [0], [0], [1], [0, 0, 1, 1], [], []>} : vector<128x4xf32>, vector<4x8xf32>, vector<128x8xf32> -> vector<128x8xf32>
    %30 = arith.addf %24, %29 : vector<128x8xf32>
    %c0_35 = arith.constant 0 : index
    %c2_36 = arith.constant 2 : index
    %c1_37 = arith.constant 1 : index
    %c0_38 = arith.constant 0 : index
    %31 = vector.load %arg1[%c0_35, %c2_36, %c1_37, %c0_38] : memref<1x4x160x4xf32, #tpu.memory_space<vmem>>, vector<1x1x128x4xf32>
    %32 = vector.shape_cast %31 : vector<1x1x128x4xf32> to vector<128x4xf32>
    %c5 = arith.constant 5 : index
    %c0_39 = arith.constant 0 : index
    %c0_40 = arith.constant 0 : index
    %33 = vector.load %arg2[%c5, %c0_39, %c0_40] : memref<9x4x8xf32, #tpu.memory_space<vmem>>, vector<1x4x8xf32>
    %34 = vector.shape_cast %33 : vector<1x4x8xf32> to vector<4x8xf32>
    %cst_41 = arith.constant dense<0.000000e+00> : vector<128x8xf32>
    %35 = tpu.matmul %32, %34, %cst_41 {dimension_numbers = #tpu.dot_dimension_numbers<[1], [0], [0], [1], [0, 0, 1, 1], [], []>} : vector<128x4xf32>, vector<4x8xf32>, vector<128x8xf32> -> vector<128x8xf32>
    %36 = arith.addf %30, %35 : vector<128x8xf32>
    %c0_42 = arith.constant 0 : index
    %c0_43 = arith.constant 0 : index
    %c16 = arith.constant 16 : index
    %c0_44 = arith.constant 0 : index
    %37 = vector.load %arg1[%c0_42, %c0_43, %c16, %c0_44] : memref<1x4x160x4xf32, #tpu.memory_space<vmem>>, vector<1x1x128x4xf32>
    %38 = vector.shape_cast %37 : vector<1x1x128x4xf32> to vector<128x4xf32>
    %c6 = arith.constant 6 : index
    %c0_45 = arith.constant 0 : index
    %c0_46 = arith.constant 0 : index
    %39 = vector.load %arg2[%c6, %c0_45, %c0_46] : memref<9x4x8xf32, #tpu.memory_space<vmem>>, vector<1x4x8xf32>
    %40 = vector.shape_cast %39 : vector<1x4x8xf32> to vector<4x8xf32>
    %cst_47 = arith.constant dense<0.000000e+00> : vector<128x8xf32>
    %41 = tpu.matmul %38, %40, %cst_47 {dimension_numbers = #tpu.dot_dimension_numbers<[1], [0], [0], [1], [0, 0, 1, 1], [], []>} : vector<128x4xf32>, vector<4x8xf32>, vector<128x8xf32> -> vector<128x8xf32>
    %42 = arith.addf %36, %41 : vector<128x8xf32>
    %c0_48 = arith.constant 0 : index
    %c1_49 = arith.constant 1 : index
    %c16_50 = arith.constant 16 : index
    %c0_51 = arith.constant 0 : index
    %43 = vector.load %arg1[%c0_48, %c1_49, %c16_50, %c0_51] : memref<1x4x160x4xf32, #tpu.memory_space<vmem>>, vector<1x1x128x4xf32>
    %44 = vector.shape_cast %43 : vector<1x1x128x4xf32> to vector<128x4xf32>
    %c7 = arith.constant 7 : index
    %c0_52 = arith.constant 0 : index
    %c0_53 = arith.constant 0 : index
    %45 = vector.load %arg2[%c7, %c0_52, %c0_53] : memref<9x4x8xf32, #tpu.memory_space<vmem>>, vector<1x4x8xf32>
    %46 = vector.shape_cast %45 : vector<1x4x8xf32> to vector<4x8xf32>
    %cst_54 = arith.constant dense<0.000000e+00> : vector<128x8xf32>
    %47 = tpu.matmul %44, %46, %cst_54 {dimension_numbers = #tpu.dot_dimension_numbers<[1], [0], [0], [1], [0, 0, 1, 1], [], []>} : vector<128x4xf32>, vector<4x8xf32>, vector<128x8xf32> -> vector<128x8xf32>
    %48 = arith.addf %42, %47 : vector<128x8xf32>
    %c0_55 = arith.constant 0 : index
    %c0_56 = arith.constant 0 : index
    %c17 = arith.constant 17 : index
    %c0_57 = arith.constant 0 : index
    %49 = vector.load %arg1[%c0_55, %c0_56, %c17, %c0_57] : memref<1x4x160x4xf32, #tpu.memory_space<vmem>>, vector<1x1x128x4xf32>
    %50 = vector.shape_cast %49 : vector<1x1x128x4xf32> to vector<128x4xf32>
    %c8 = arith.constant 8 : index
    %c0_58 = arith.constant 0 : index
    %c0_59 = arith.constant 0 : index
    %51 = vector.load %arg2[%c8, %c0_58, %c0_59] : memref<9x4x8xf32, #tpu.memory_space<vmem>>, vector<1x4x8xf32>
    %52 = vector.shape_cast %51 : vector<1x4x8xf32> to vector<4x8xf32>
    %cst_60 = arith.constant dense<0.000000e+00> : vector<128x8xf32>
    %53 = tpu.matmul %50, %52, %cst_60 {dimension_numbers = #tpu.dot_dimension_numbers<[1], [0], [0], [1], [0, 0, 1, 1], [], []>} : vector<128x4xf32>, vector<4x8xf32>, vector<128x8xf32> -> vector<128x8xf32>
    %54 = arith.addf %48, %53 : vector<128x8xf32>
    %55 = tpu.iota {dimensions = array<i32: 0>} : vector<128x1xi32>
    %c16_i32 = arith.constant 16 : i32
    %c0_i32 = arith.constant 0 : i32
    %56 = arith.cmpi eq, %c16_i32, %c0_i32 : i32
    %c1_i32 = arith.constant 1 : i32
    %57 = arith.select %56, %c1_i32, %c16_i32 : i32
    %58 = vector.broadcast %57 : i32 to vector<128x1xi32>
    %59 = arith.remsi %55, %58 : vector<128x1xi32>
    %c0_i32_61 = arith.constant 0 : i32
    %60 = vector.broadcast %c0_i32_61 : i32 to vector<128x1xi32>
    %61 = arith.cmpi ne, %59, %60 : vector<128x1xi32>
    %c0_i32_62 = arith.constant 0 : i32
    %62 = vector.broadcast %c0_i32_62 : i32 to vector<128x1xi32>
    %63 = arith.cmpi slt, %59, %62 : vector<128x1xi32>
    %c0_i32_63 = arith.constant 0 : i32
    %64 = arith.cmpi slt, %57, %c0_i32_63 : i32
    %65 = vector.broadcast %64 : i1 to vector<128x1xi1>
    %66 = vector.broadcast %65 : vector<128x1xi1> to vector<128x1xi1>
    %67 = arith.xori %63, %66 : vector<128x1xi1>
    %68 = arith.andi %67, %61 : vector<128x1xi1>
    %69 = vector.broadcast %57 : i32 to vector<128x1xi32>
    %70 = arith.addi %59, %69 : vector<128x1xi32>
    %71 = arith.select %68, %70, %59 : vector<128x1xi1>, vector<128x1xi32>
    %c8_i32 = arith.constant 8 : i32
    %72 = vector.broadcast %c8_i32 : i32 to vector<128x1xi32>
    %73 = arith.cmpi slt, %71, %72 : vector<128x1xi32>
    %c0_64 = arith.constant 0 : index
    %c0_65 = arith.constant 0 : index
    %74 = vector.load %arg5[%c0_64, %c0_65] : memref<1x8xf32, #tpu.memory_space<vmem>>, vector<1x8xf32>
    %75 = vector.broadcast %74 : vector<1x8xf32> to vector<128x8xf32>
    %76 = arith.addf %54, %75 : vector<128x8xf32>
    %cst_66 = arith.constant 0.000000e+00 : f32
    %77 = vector.broadcast %cst_66 : f32 to vector<128x8xf32>
    %78 = arith.maximumf %76, %77 : vector<128x8xf32>
    %cst_67 = arith.constant 0.000000e+00 : f32
    %79 = vector.shape_cast %73 : vector<128x1xi1> to vector<128x1xi1>
    %80 = vector.broadcast %79 : vector<128x1xi1> to vector<128x8xi1>
    %81 = vector.broadcast %cst_67 : f32 to vector<128x8xf32>
    %82 = arith.select %80, %78, %81 : vector<128x8xi1>, vector<128x8xf32>
    %cst_68 = arith.constant 0.000000e+00 : f32
    %83 = vector.broadcast %cst_68 : f32 to vector<24x8xf32>
    %c0_69 = arith.constant 0 : index
    %c0_70 = arith.constant 0 : index
    %84 = vector.load %arg8[%c0_69, %c0_70] : memref<176x8xf32, #tpu.memory_space<vmem>>, vector<24x8xf32>
    tpu.vector_store %arg8[%c0_69, %c0_70], %83 {strides = array<i32>} : memref<176x8xf32, #tpu.memory_space<vmem>>, vector<24x8xf32>,
    %cst_71 = arith.constant 0.000000e+00 : f32
    %85 = vector.broadcast %cst_71 : f32 to vector<32x8xf32>
    %c144 = arith.constant 144 : index
    %c0_72 = arith.constant 0 : index
    %86 = vector.load %arg8[%c144, %c0_72] : memref<176x8xf32, #tpu.memory_space<vmem>>, vector<32x8xf32>
    tpu.vector_store %arg8[%c144, %c0_72], %85 {strides = array<i32>} : memref<176x8xf32, #tpu.memory_space<vmem>>, vector<32x8xf32>,
    %c17_73 = arith.constant 17 : index
    %c0_74 = arith.constant 0 : index
    %87 = vector.load %arg8[%c17_73, %c0_74] : memref<176x8xf32, #tpu.memory_space<vmem>>, vector<128x8xf32>
    tpu.vector_store %arg8[%c17_73, %c0_74], %82 {strides = array<i32>} : memref<176x8xf32, #tpu.memory_space<vmem>>, vector<128x8xf32>,
    %cst_75 = arith.constant 0.000000e+00 : f32
    %88 = vector.broadcast %cst_75 : f32 to vector<128x8xf32>
    %c0_76 = arith.constant 0 : index
    %c0_77 = arith.constant 0 : index
    %89 = vector.load %arg8[%c0_76, %c0_77] : memref<176x8xf32, #tpu.memory_space<vmem>>, vector<128x8xf32>
    %c0_78 = arith.constant 0 : index
    %c0_79 = arith.constant 0 : index
    %c0_80 = arith.constant 0 : index
    %90 = vector.load %arg3[%c0_78, %c0_79, %c0_80] : memref<9x8x8xf32, #tpu.memory_space<vmem>>, vector<1x8x8xf32>
    %91 = vector.shape_cast %90 : vector<1x8x8xf32> to vector<8x8xf32>
    %cst_81 = arith.constant dense<0.000000e+00> : vector<128x8xf32>
    %92 = tpu.matmul %89, %91, %cst_81 {dimension_numbers = #tpu.dot_dimension_numbers<[1], [0], [0], [1], [0, 0, 1, 1], [], []>} : vector<128x8xf32>, vector<8x8xf32>, vector<128x8xf32> -> vector<128x8xf32>
    %93 = arith.addf %88, %92 : vector<128x8xf32>
    %c1_82 = arith.constant 1 : index
    %c0_83 = arith.constant 0 : index
    %94 = vector.load %arg8[%c1_82, %c0_83] : memref<176x8xf32, #tpu.memory_space<vmem>>, vector<128x8xf32>
    %c1_84 = arith.constant 1 : index
    %c0_85 = arith.constant 0 : index
    %c0_86 = arith.constant 0 : index
    %95 = vector.load %arg3[%c1_84, %c0_85, %c0_86] : memref<9x8x8xf32, #tpu.memory_space<vmem>>, vector<1x8x8xf32>
    %96 = vector.shape_cast %95 : vector<1x8x8xf32> to vector<8x8xf32>
    %cst_87 = arith.constant dense<0.000000e+00> : vector<128x8xf32>
    %97 = tpu.matmul %94, %96, %cst_87 {dimension_numbers = #tpu.dot_dimension_numbers<[1], [0], [0], [1], [0, 0, 1, 1], [], []>} : vector<128x8xf32>, vector<8x8xf32>, vector<128x8xf32> -> vector<128x8xf32>
    %98 = arith.addf %93, %97 : vector<128x8xf32>
    %c2_88 = arith.constant 2 : index
    %c0_89 = arith.constant 0 : index
    %99 = vector.load %arg8[%c2_88, %c0_89] : memref<176x8xf32, #tpu.memory_space<vmem>>, vector<128x8xf32>
    %c2_90 = arith.constant 2 : index
    %c0_91 = arith.constant 0 : index
    %c0_92 = arith.constant 0 : index
    %100 = vector.load %arg3[%c2_90, %c0_91, %c0_92] : memref<9x8x8xf32, #tpu.memory_space<vmem>>, vector<1x8x8xf32>
    %101 = vector.shape_cast %100 : vector<1x8x8xf32> to vector<8x8xf32>
    %cst_93 = arith.constant dense<0.000000e+00> : vector<128x8xf32>
    %102 = tpu.matmul %99, %101, %cst_93 {dimension_numbers = #tpu.dot_dimension_numbers<[1], [0], [0], [1], [0, 0, 1, 1], [], []>} : vector<128x8xf32>, vector<8x8xf32>, vector<128x8xf32> -> vector<128x8xf32>
    %103 = arith.addf %98, %102 : vector<128x8xf32>
    %c16_94 = arith.constant 16 : index
    %c0_95 = arith.constant 0 : index
    %104 = vector.load %arg8[%c16_94, %c0_95] : memref<176x8xf32, #tpu.memory_space<vmem>>, vector<128x8xf32>
    %c3_96 = arith.constant 3 : index
    %c0_97 = arith.constant 0 : index
    %c0_98 = arith.constant 0 : index
    %105 = vector.load %arg3[%c3_96, %c0_97, %c0_98] : memref<9x8x8xf32, #tpu.memory_space<vmem>>, vector<1x8x8xf32>
    %106 = vector.shape_cast %105 : vector<1x8x8xf32> to vector<8x8xf32>
    %cst_99 = arith.constant dense<0.000000e+00> : vector<128x8xf32>
    %107 = tpu.matmul %104, %106, %cst_99 {dimension_numbers = #tpu.dot_dimension_numbers<[1], [0], [0], [1], [0, 0, 1, 1], [], []>} : vector<128x8xf32>, vector<8x8xf32>, vector<128x8xf32> -> vector<128x8xf32>
    %108 = arith.addf %103, %107 : vector<128x8xf32>
    %c17_100 = arith.constant 17 : index
    %c0_101 = arith.constant 0 : index
    %109 = vector.load %arg8[%c17_100, %c0_101] : memref<176x8xf32, #tpu.memory_space<vmem>>, vector<128x8xf32>
    %c4_102 = arith.constant 4 : index
    %c0_103 = arith.constant 0 : index
    %c0_104 = arith.constant 0 : index
    %110 = vector.load %arg3[%c4_102, %c0_103, %c0_104] : memref<9x8x8xf32, #tpu.memory_space<vmem>>, vector<1x8x8xf32>
    %111 = vector.shape_cast %110 : vector<1x8x8xf32> to vector<8x8xf32>
    %cst_105 = arith.constant dense<0.000000e+00> : vector<128x8xf32>
    %112 = tpu.matmul %109, %111, %cst_105 {dimension_numbers = #tpu.dot_dimension_numbers<[1], [0], [0], [1], [0, 0, 1, 1], [], []>} : vector<128x8xf32>, vector<8x8xf32>, vector<128x8xf32> -> vector<128x8xf32>
    %113 = arith.addf %108, %112 : vector<128x8xf32>
    %c18 = arith.constant 18 : index
    %c0_106 = arith.constant 0 : index
    %114 = vector.load %arg8[%c18, %c0_106] : memref<176x8xf32, #tpu.memory_space<vmem>>, vector<128x8xf32>
    %c5_107 = arith.constant 5 : index
    %c0_108 = arith.constant 0 : index
    %c0_109 = arith.constant 0 : index
    %115 = vector.load %arg3[%c5_107, %c0_108, %c0_109] : memref<9x8x8xf32, #tpu.memory_space<vmem>>, vector<1x8x8xf32>
    %116 = vector.shape_cast %115 : vector<1x8x8xf32> to vector<8x8xf32>
    %cst_110 = arith.constant dense<0.000000e+00> : vector<128x8xf32>
    %117 = tpu.matmul %114, %116, %cst_110 {dimension_numbers = #tpu.dot_dimension_numbers<[1], [0], [0], [1], [0, 0, 1, 1], [], []>} : vector<128x8xf32>, vector<8x8xf32>, vector<128x8xf32> -> vector<128x8xf32>
    %118 = arith.addf %113, %117 : vector<128x8xf32>
    %c32 = arith.constant 32 : index
    %c0_111 = arith.constant 0 : index
    %119 = vector.load %arg8[%c32, %c0_111] : memref<176x8xf32, #tpu.memory_space<vmem>>, vector<128x8xf32>
    %c6_112 = arith.constant 6 : index
    %c0_113 = arith.constant 0 : index
    %c0_114 = arith.constant 0 : index
    %120 = vector.load %arg3[%c6_112, %c0_113, %c0_114] : memref<9x8x8xf32, #tpu.memory_space<vmem>>, vector<1x8x8xf32>
    %121 = vector.shape_cast %120 : vector<1x8x8xf32> to vector<8x8xf32>
    %cst_115 = arith.constant dense<0.000000e+00> : vector<128x8xf32>
    %122 = tpu.matmul %119, %121, %cst_115 {dimension_numbers = #tpu.dot_dimension_numbers<[1], [0], [0], [1], [0, 0, 1, 1], [], []>} : vector<128x8xf32>, vector<8x8xf32>, vector<128x8xf32> -> vector<128x8xf32>
    %123 = arith.addf %118, %122 : vector<128x8xf32>
    %c33 = arith.constant 33 : index
    %c0_116 = arith.constant 0 : index
    %124 = vector.load %arg8[%c33, %c0_116] : memref<176x8xf32, #tpu.memory_space<vmem>>, vector<128x8xf32>
    %c7_117 = arith.constant 7 : index
    %c0_118 = arith.constant 0 : index
    %c0_119 = arith.constant 0 : index
    %125 = vector.load %arg3[%c7_117, %c0_118, %c0_119] : memref<9x8x8xf32, #tpu.memory_space<vmem>>, vector<1x8x8xf32>
    %126 = vector.shape_cast %125 : vector<1x8x8xf32> to vector<8x8xf32>
    %cst_120 = arith.constant dense<0.000000e+00> : vector<128x8xf32>
    %127 = tpu.matmul %124, %126, %cst_120 {dimension_numbers = #tpu.dot_dimension_numbers<[1], [0], [0], [1], [0, 0, 1, 1], [], []>} : vector<128x8xf32>, vector<8x8xf32>, vector<128x8xf32> -> vector<128x8xf32>
    %128 = arith.addf %123, %127 : vector<128x8xf32>
    %c34 = arith.constant 34 : index
    %c0_121 = arith.constant 0 : index
    %129 = vector.load %arg8[%c34, %c0_121] : memref<176x8xf32, #tpu.memory_space<vmem>>, vector<128x8xf32>
    %c8_122 = arith.constant 8 : index
    %c0_123 = arith.constant 0 : index
    %c0_124 = arith.constant 0 : index
    %130 = vector.load %arg3[%c8_122, %c0_123, %c0_124] : memref<9x8x8xf32, #tpu.memory_space<vmem>>, vector<1x8x8xf32>
    %131 = vector.shape_cast %130 : vector<1x8x8xf32> to vector<8x8xf32>
    %cst_125 = arith.constant dense<0.000000e+00> : vector<128x8xf32>
    %132 = tpu.matmul %129, %131, %cst_125 {dimension_numbers = #tpu.dot_dimension_numbers<[1], [0], [0], [1], [0, 0, 1, 1], [], []>} : vector<128x8xf32>, vector<8x8xf32>, vector<128x8xf32> -> vector<128x8xf32>
    %133 = arith.addf %128, %132 : vector<128x8xf32>
    %c0_126 = arith.constant 0 : index
    %c3_127 = arith.constant 3 : index
    %c0_128 = arith.constant 0 : index
    %c0_129 = arith.constant 0 : index
    %134 = vector.load %arg1[%c0_126, %c3_127, %c0_128, %c0_129] : memref<1x4x160x4xf32, #tpu.memory_space<vmem>>, vector<1x1x128x4xf32>
    %135 = vector.shape_cast %134 : vector<1x1x128x4xf32> to vector<128x4xf32>
    %c0_130 = arith.constant 0 : index
    %c0_131 = arith.constant 0 : index
    %136 = vector.load %arg4[%c0_130, %c0_131] : memref<4x8xf32, #tpu.memory_space<vmem>>, vector<4x8xf32>
    %cst_132 = arith.constant dense<0.000000e+00> : vector<128x8xf32>
    %137 = tpu.matmul %135, %136, %cst_132 {dimension_numbers = #tpu.dot_dimension_numbers<[1], [0], [0], [1], [0, 0, 1, 1], [], []>} : vector<128x4xf32>, vector<4x8xf32>, vector<128x8xf32> -> vector<128x8xf32>
    %138 = arith.addf %133, %137 : vector<128x8xf32>
    %c0_133 = arith.constant 0 : index
    %c0_134 = arith.constant 0 : index
    %139 = vector.load %arg6[%c0_133, %c0_134] : memref<1x8xf32, #tpu.memory_space<vmem>>, vector<1x8xf32>
    %140 = vector.broadcast %139 : vector<1x8xf32> to vector<128x8xf32>
    %141 = arith.addf %138, %140 : vector<128x8xf32>
    %cst_135 = arith.constant 0.000000e+00 : f32
    %142 = vector.broadcast %cst_135 : f32 to vector<128x8xf32>
    %143 = arith.maximumf %141, %142 : vector<128x8xf32>
    %144 = vector.shape_cast %143 : vector<128x8xf32> to vector<8x16x8xf32>
    %145 = vector.extract_strided_slice %144 {offsets = [0, 0, 0], sizes = [8, 8, 8], strides = [1, 1, 1]} : vector<8x16x8xf32> to vector<8x8x8xf32>
    %c0_136 = arith.constant 0 : index
    %c0_137 = arith.constant 0 : index
    %c0_138 = arith.constant 0 : index
    %c0_139 = arith.constant 0 : index
    %146 = vector.load %arg7[%c0_136, %c0_137, %c0_138, %c0_139] : memref<1x8x8x8xf32, #tpu.memory_space<vmem>>, vector<1x8x8x8xf32>
    %147 = vector.shape_cast %146 : vector<1x8x8x8xf32> to vector<8x8x8xf32>
    %148 = vector.shape_cast %145 : vector<8x8x8xf32> to vector<1x8x8x8xf32>
    tpu.vector_store %arg7[%c0_136, %c0_137, %c0_138, %c0_139], %148 {strides = array<i32>} : memref<1x8x8x8xf32, #tpu.memory_space<vmem>>, vector<1x8x8x8xf32>,
    return
  }
  func.func @transform_0(%arg0: i32) -> (i32, i32, i32, i32) {
    %c0_i32 = arith.constant 0 : i32
    %c0_i32_0 = arith.constant 0 : i32
    %c0_i32_1 = arith.constant 0 : i32
    %c0_i32_2 = arith.constant 0 : i32
    return %arg0, %c0_i32, %c0_i32_0, %c0_i32_1 : i32, i32, i32, i32
  }
  func.func @transform_1(%arg0: i32) -> (i32, i32, i32) {
    %c0_i32 = arith.constant 0 : i32
    %c0_i32_0 = arith.constant 0 : i32
    %c0_i32_1 = arith.constant 0 : i32
    %c0_i32_2 = arith.constant 0 : i32
    return %c0_i32, %c0_i32_0, %c0_i32_1 : i32, i32, i32
  }
  func.func @transform_2(%arg0: i32) -> (i32, i32, i32) {
    %c0_i32 = arith.constant 0 : i32
    %c0_i32_0 = arith.constant 0 : i32
    %c0_i32_1 = arith.constant 0 : i32
    %c0_i32_2 = arith.constant 0 : i32
    return %c0_i32, %c0_i32_0, %c0_i32_1 : i32, i32, i32
  }
  func.func @transform_3(%arg0: i32) -> (i32, i32) {
    %c0_i32 = arith.constant 0 : i32
    %c0_i32_0 = arith.constant 0 : i32
    %c0_i32_1 = arith.constant 0 : i32
    return %c0_i32, %c0_i32_0 : i32, i32
  }
  func.func @transform_4(%arg0: i32) -> (i32, i32) {
    %c0_i32 = arith.constant 0 : i32
    %c0_i32_0 = arith.constant 0 : i32
    %c0_i32_1 = arith.constant 0 : i32
    return %c0_i32, %c0_i32_0 : i32, i32
  }
  func.func @transform_5(%arg0: i32) -> (i32, i32) {
    %c0_i32 = arith.constant 0 : i32
    %c0_i32_0 = arith.constant 0 : i32
    %c0_i32_1 = arith.constant 0 : i32
    return %c0_i32, %c0_i32_0 : i32, i32
  }
  func.func @transform_6(%arg0: i32) -> (i32, i32, i32, i32) {
    %c0_i32 = arith.constant 0 : i32
    %c0_i32_0 = arith.constant 0 : i32
    %c0_i32_1 = arith.constant 0 : i32
    %c0_i32_2 = arith.constant 0 : i32
    return %arg0, %c0_i32, %c0_i32_0, %c0_i32_1 : i32, i32, i32, i32
  }
}

</mosaic_0001>

<bundles_post_ra>
// kernel: basic_block_partial_nhwc.1
= control target key start
LH: loop header
LB: loop body
LE: loop exit
PB: predicated region body
PF: predicated region fallthrough
CT: control target
= control target key end

     0   :  { %11 = vsyncpa [#allocation4], 0  ;;  %s7535_s0 = inlined_call_operand.vmem [shape: f32[2,4,160,4], index: 0, kind: input, shape index: {}]   ;;  %s7536_s1 = inlined_call_operand.vmem [shape: f32[9,4,8], index: 1, kind: input, shape index: {}]   ;;  %s7537_s2 = inlined_call_operand.vmem [shape: f32[9,8,8], index: 2, kind: input, shape index: {}]   ;;  %s7538_s3 = inlined_call_operand.vmem [shape: f32[4,8], index: 3, kind: input, shape index: {}]   ;;  %s7539_s4 = inlined_call_operand.vmem [shape: f32[1,8], index: 4, kind: input, shape index: {}]   ;;  %s7540_s5 = inlined_call_operand.vmem [shape: f32[1,8], index: 5, kind: input, shape index: {}]   ;;  %s7541_s6 = inlined_call_operand.hbm [shape: f32[2,8,8,8], index: 6, kind: output, shape index: {}]  }
   0x1   :  { %13 = vsyncpa [#allocation4 + $0x1], 0  ;;  %s6233_s21 = smov 0   ;;  %s6235_s22 = smov 0  }
   0x2   :  { %s6237_s23 = smov 0   ;;  %s6239_s24 = smov 0  }
   0x3 LB: > { %s6254_s25 = sadd.s32 4294967295, %s6192_s24   ;;  %s4830_s26 = sadd.s32 4294967294, %s6192_s24   ;;  %s6192_s24 = sphi %s6239_s24, %s7547_s24   ;;  %s6188_s23 = sphi %s6237_s23, %s7546_s23   ;;  %s6184_s22 = sphi %s6235_s22, %s7545_s22   ;;  %s6180_s21 = sphi %s6233_s21, %s7544_s21  }
   0x4   : > { %s6258_s27 = sadd.s32 1, %s6192_s24   ;;  %s157_s28 = sadd.s32 1, %s6188_s23 }
   0x5   : > { %s154_s29 = ssub.s32 %s6192_s24, %s6258_s27  ;;  %p167_p0 = scmp.ne.s32.totalorder %s6188_s23, %s6184_s22 }
   0x6   : > { %p155_p1 = scmp.eq.s32.totalorder %s154_s29, 0  ;;  %p168_p2 = scmp.eq.s32.totalorder %s6254_s25, 1 }
   0x7   : > { %p173_p3 = scmp.ne.s32.totalorder %s6184_s22, %s6180_s21  ;;  %p174_p4 = scmp.eq.s32.totalorder %s4830_s26, 1 }
   0x8   : > { %s6269_s30 = scalar_select %p155_p1, %s6188_s23, %s157_s28  }
   0x9   : > { %p6271_p5 = por %p168_p2, %p167_p0  ;;  %p6275_p6 = por %p174_p4, %p173_p3 }
   0xa   : > { %p4833_p7 = scmp.ge.s32.totalorder %s6192_s24, 1  ;;  %p215_p8 = scmp.lt.s32.totalorder %s6192_s24, 3 }
   0xc   : > { %p216_p9 = pnand %p4833_p7, %p215_p8 }
   0xd   : > { %p245_p10 = scmp.lt.s32.totalorder (!%p216_p9), %s6254_s25, 1  ;;  %s6195_s28 = smov (!%p216_p9), [#allocation3]  }
   0xe   : > { %219 = sbr.rel (%p216_p9) target bundleno = 720 (0x2d0), region = 44  ;;  %s6136_s29 = sshll.u32 (!%p216_p9), %s6195_s28, 4  ;;  %s6137_s29 = int_to_ptr.vmem [resolvable:$false] %s6136_s29 }
   0xf   : > { %s6138_s9 = scalar_lea.vmem (!%p216_p9), %s6137_s29, 2048 }
  0x13   : > { %v4852_v0 = vld [vmem:[%s7536_s1 + $0x4] sm:$0xf]  ;;  %vm335_vm0 = vcmask 1043456   ;;  %v266_v1 = vld [vmem:[%s7536_s1] sm:$0xf]  ;;  %s246_s15 = scalar_select %p245_p10, %s6254_s25, 1 }
  0x14   : > { %6087 = vmatprep.subr.msk.mxu1 %vm335_vm0, %v4852_v0  ;;  %5593 = vmatprep.subr.msk.mxu0 %vm335_vm0, %v4852_v0  ;;  %v4887_v2 = vld [vmem:[%s7536_s1 + $0x8] sm:$0xf]  ;;  %vm286_vm1 = vcmask 31744   ;;  %v4921_v9 = vld [vmem:[%s7536_s1 + $0xc] sm:$0xf]  ;;  %vm2604_vm2 = vcmask 64512  }
  0x15   : > { %6088 = vmatpush3.msk.msra.mxu1 %vm335_vm0, %v4852_v0  ;;  %5594 = vmatpush3.msk.msra.mxu0 %vm335_vm0, %v4852_v0  ;;  %s6089_s16 = smul.u32 640, %s246_s15  ;;  %v4955_v10 = vld [vmem:[%s7536_s1 + $0x10] sm:$0xf]  ;;  %v6404_v27 = vld [vmem:[%s7536_s1 + $0x14] sm:$0xf]  ;;  %s5269_s15 = sshll.u32 %s6254_s25, 10 }
  0x16   : > { %5619 = vmatprep.subr.msk.mxu1 %vm335_vm0, %v266_v1  ;;  %5645 = vmatprep.subr.msk.mxu0 %vm335_vm0, %v4887_v2  ;;  %v6409_v28 = vld [vmem:[%s7536_s1 + $0x18] sm:$0xf]  ;;  %v6564_v61 = vld [vmem:[%s7536_s1 + $0x1c] sm:$0xf]  ;;  %v6569_v62 = vld [vmem:[%s7536_s1 + $0x20] sm:$0xf]  ;;  %s7487_s20 = scalar_lea.hbm %s7541_s6, %s5269_s15 }
  0x17   : > { %s6301_s19 = scalar_lea.vmem %s7535_s0, %s6089_s16 }
  0x18   : > { %v4836_v3 = vld [vmem:[%s6301_s19 + $0xa0] sm:$0xff]  ;;  %v4837_v5 = vld [vmem:[%s6301_s19 + $0xa8] sm:$0xff]  ;;  %v6315_v7 = vld [vmem:[%s6301_s19 + $0xb0] sm:$0xff] }
  0x19   : > { %v6305_v4 = vld [vmem:[%s6301_s19 + $0xe0] sm:$0xff]  ;;  %5595 = vmatprep.mubr.msk.f32.mxu0 %vm286_vm1, %v4836_v3  ;;  %v6312_v6 = vld [vmem:[%s6301_s19 + $0xe8] sm:$0xff]  ;;  %v6318_v8 = vld [vmem:[%s6301_s19 + $0xf0] sm:$0xff] }
  0x1a   : > { %5607 = vmatprep.mubr.msk.f32.mxu1 %vm286_vm1, %v6305_v4  ;;  %5596 = vmatmul.mubr.msk.f32.vlgmr.msra.gmra.mxu0 %vm286_vm1, %v4837_v5  ;;  %v6332_v11 = vld [vmem:[%s6301_s19 + $0xb8] sm:$0xff]  ;;  %v6342_v13 = vld [vmem:[%s6301_s19 + $0xc0] sm:$0xff]  ;;  %v6358_v15 = vld [vmem:[%s6301_s19 + $0xc8] sm:$0xff] }
  0x1b   : > { %5608 = vmatmul.mubr.msk.f32.vlgmr.msra.gmra.mxu1 %vm286_vm1, %v6312_v6  ;;  %5646 = vmatpush3.msk.msra.mxu0 %vm335_vm0, %v4887_v2  ;;  %v6335_v12 = vld [vmem:[%s6301_s19 + $0xf8] sm:$0xff]  ;;  %v6345_v14 = vld [vmem:[%s6301_s19 + $0x100] sm:$0xff]  ;;  %v6361_v16 = vld [vmem:[%s6301_s19 + $0x108] sm:$0xff] }
  0x1c   : > { %5620 = vmatpush3.msk.msra.mxu1 %vm335_vm0, %v266_v1  ;;  %5598 = vmatprep.mubr.msk.f32.mxu0 %vm286_vm1, %v6315_v7  ;;  %v6364_v17 = vld [vmem:[%s6301_s19 + $0xd0] sm:$0xff]  ;;  %v6378_v19 = vld [vmem:[%s6301_s19 + $0xd8] sm:$0xff]  ;;  %v250_v21 = vld [vmem:[%s6301_s19] sm:$0xff] }
  0x1d   : > { %5610 = vmatprep.mubr.msk.f32.mxu1 %vm286_vm1, %v6318_v8  ;;  %5671 = vmatprep.subr.msk.mxu1 %vm335_vm0, %v4921_v9  ;;  %v6367_v18 = vld [vmem:[%s6301_s19 + $0x110] sm:$0xff]  ;;  %v6381_v20 = vld [vmem:[%s6301_s19 + $0x118] sm:$0xff]  ;;  %v680_v22 = vld [vmem:[%s6301_s19 + $0x1] sm:$0xff] }
  0x1e   : > { %5697 = vmatprep.subr.msk.mxu0 %vm335_vm0, %v4955_v10  ;;  %5599 = vmatmul.mubr.msk.f32.gmra.mxu0 %vm286_vm1, %v6332_v11  ;;  %v251_v23 = vld [vmem:[%s6301_s19 + $0x8] sm:$0xff]  ;;  %v6394_v25 = vld [vmem:[%s6301_s19 + $0x10] sm:$0xff]  ;;  %v6414_v29 = vld [vmem:[%s6301_s19 + $0x18] sm:$0xff] }
  0x1f   : > { %5611 = vmatmul.mubr.msk.f32.gmra.mxu1 %vm286_vm1, %v6335_v12  ;;  %5601 = vmatprep.mubr.msk.f32.mxu0 %vm286_vm1, %v6342_v13  ;;  %v681_v24 = vld [vmem:[%s6301_s19 + $0x9] sm:$0xff]  ;;  %v6397_v26 = vld [vmem:[%s6301_s19 + $0x11] sm:$0xff]  ;;  %v6417_v30 = vld [vmem:[%s6301_s19 + $0x19] sm:$0xff] }
  0x20   : > { %5613 = vmatprep.mubr.msk.f32.mxu1 %vm286_vm1, %v6345_v14  ;;  %v6424_v31 = vld [vmem:[%s6301_s19 + $0x20] sm:$0xff]  ;;  %v6442_v33 = vld [vmem:[%s6301_s19 + $0x28] sm:$0xff]  ;;  %v6448_v35 = vld [vmem:[%s6301_s19 + $0x30] sm:$0xff] }
  0x21   : > { %v6427_v32 = vld [vmem:[%s6301_s19 + $0x21] sm:$0xff]  ;;  %v6445_v34 = vld [vmem:[%s6301_s19 + $0x29] sm:$0xff]  ;;  %v6451_v36 = vld [vmem:[%s6301_s19 + $0x31] sm:$0xff] }
  0x22   : > { %5602 = vmatmul.mubr.msk.f32.gmra.mxu0 %vm286_vm1, %v6358_v15  ;;  %v6462_v37 = vld [vmem:[%s6301_s19 + $0x38] sm:$0xff]  ;;  %v6468_v39 = vld [vmem:[%s6301_s19 + $0x40] sm:$0xff]  ;;  %v6482_v41 = vld [vmem:[%s6301_s19 + $0x48] sm:$0xff] }
  0x23   : > { %5614 = vmatmul.mubr.msk.f32.gmra.mxu1 %vm286_vm1, %v6361_v16  ;;  %5604 = vmatprep.mubr.msk.f32.mxu0 %vm286_vm1, %v6364_v17  ;;  %v6465_v38 = vld [vmem:[%s6301_s19 + $0x39] sm:$0xff]  ;;  %v6471_v40 = vld [vmem:[%s6301_s19 + $0x41] sm:$0xff]  ;;  %v6485_v42 = vld [vmem:[%s6301_s19 + $0x49] sm:$0xff] }
  0x24   : > { %5616 = vmatprep.mubr.msk.f32.mxu1 %vm286_vm1, %v6367_v18  ;;  %v6488_v43 = vld [vmem:[%s6301_s19 + $0x50] sm:$0xff]  ;;  %v6502_v45 = vld [vmem:[%s6301_s19 + $0x58] sm:$0xff]  ;;  %v6508_v47 = vld [vmem:[%s6301_s19 + $0x60] sm:$0xff] }
  0x25   : > { %v6491_v44 = vld [vmem:[%s6301_s19 + $0x51] sm:$0xff]  ;;  %v6505_v46 = vld [vmem:[%s6301_s19 + $0x59] sm:$0xff]  ;;  %v6511_v48 = vld [vmem:[%s6301_s19 + $0x61] sm:$0xff] }
  0x26   : > { %5605 = vmatmul.mubr.msk.f32.gmra.mxu0 %vm286_vm1, %v6378_v19  ;;  %v6522_v49 = vld [vmem:[%s6301_s19 + $0x68] sm:$0xff]  ;;  %v6528_v51 = vld [vmem:[%s6301_s19 + $0x70] sm:$0xff]  ;;  %v6542_v53 = vld [vmem:[%s6301_s19 + $0x78] sm:$0xff] }
  0x27   : > { %5617 = vmatmul.mubr.msk.f32.gmra.mxu1 %vm286_vm1, %v6381_v20  ;;  %5647 = vmatprep.mubr.msk.f32.mxu0 %vm286_vm1, %v680_v22  ;;  %v6525_v50 = vld [vmem:[%s6301_s19 + $0x69] sm:$0xff]  ;;  %v6531_v52 = vld [vmem:[%s6301_s19 + $0x71] sm:$0xff]  ;;  %v6545_v54 = vld [vmem:[%s6301_s19 + $0x79] sm:$0xff] }
  0x28   : > { %5621 = vmatprep.mubr.msk.f32.mxu1 %vm286_vm1, %v250_v21  ;;  %v4905_v55 = vld [vmem:[%s6301_s19 + $0x140] sm:$0xff]  ;;  %v4906_v57 = vld [vmem:[%s6301_s19 + $0x148] sm:$0xff]  ;;  %v4907_v59 = vld [vmem:[%s6301_s19 + $0x150] sm:$0xff] }
  0x29   : > { %v4939_v56 = vld [vmem:[%s6301_s19 + $0x1e0] sm:$0xff]  ;;  %v4940_v58 = vld [vmem:[%s6301_s19 + $0x1e8] sm:$0xff]  ;;  %v4941_v60 = vld [vmem:[%s6301_s19 + $0x1f0] sm:$0xff] }
  0x2a   : > { %5648 = vmatmul.mubr.msk.f32.vlgmr.msra.gmra.mxu0 %vm286_vm1, %v681_v24  ;;  %v4908_v63 = vld [vmem:[%s6301_s19 + $0x158] sm:$0xff]  ;;  %v4909_v1 = vld [vmem:[%s6301_s19 + $0x160] sm:$0xff]  ;;  %v4910_v3 = vld [vmem:[%s6301_s19 + $0x168] sm:$0xff] }
  0x2b   : > { %5622 = vmatmul.mubr.msk.f32.vlgmr.msra.gmra.mxu1 %vm286_vm1, %v251_v23  ;;  %5698 = vmatpush3.msk.msra.mxu0 %vm335_vm0, %v4955_v10  ;;  %v4942_v0 = vld [vmem:[%s6301_s19 + $0x1f8] sm:$0xff]  ;;  %v4943_v2 = vld [vmem:[%s6301_s19 + $0x200] sm:$0xff]  ;;  %v4944_v5 = vld [vmem:[%s6301_s19 + $0x208] sm:$0xff] }
  0x2c   : > { %5672 = vmatpush3.msk.msra.mxu1 %vm335_vm0, %v4921_v9  ;;  %5624 = vmatprep.mubr.msk.f32.mxu1 %vm286_vm1, %v6394_v25  ;;  %v4911_v9 = vld [vmem:[%s6301_s19 + $0x170] sm:$0xff]  ;;  %v4912_v21 = vld [vmem:[%s6301_s19 + $0x178] sm:$0xff]  ;;  %v4913_v23 = vld [vmem:[%s6301_s19 + $0x180] sm:$0xff] }
  0x2d   : > { %5650 = vmatprep.mubr.msk.f32.mxu0 %vm286_vm1, %v6397_v26  ;;  %5723 = vmatprep.subr.msk.mxu1 %vm335_vm0, %v6404_v27  ;;  %v4945_v10 = vld [vmem:[%s6301_s19 + $0x210] sm:$0xff]  ;;  %v4946_v22 = vld [vmem:[%s6301_s19 + $0x218] sm:$0xff]  ;;  %v4947_v24 = vld [vmem:[%s6301_s19 + $0x220] sm:$0xff] }
  0x2e   : > { %5749 = vmatprep.subr.msk.mxu0 %vm335_vm0, %v6409_v28  ;;  %5651 = vmatmul.mubr.msk.f32.gmra.mxu0 %vm286_vm1, %v6417_v30 }
  0x2f   : > { %5625 = vmatmul.mubr.msk.f32.gmra.mxu1 %vm286_vm1, %v6414_v29  ;;  %5653 = vmatprep.mubr.msk.f32.mxu0 %vm286_vm1, %v6427_v32 }
  0x30   : > { %5627 = vmatprep.mubr.msk.f32.mxu1 %vm286_vm1, %v6424_v31 }
  0x32   : > { %5654 = vmatmul.mubr.msk.f32.gmra.mxu0 %vm286_vm1, %v6445_v34 }
  0x33   : > { %5628 = vmatmul.mubr.msk.f32.gmra.mxu1 %vm286_vm1, %v6442_v33  ;;  %5656 = vmatprep.mubr.msk.f32.mxu0 %vm286_vm1, %v6451_v36 }
  0x34   : > { %5630 = vmatprep.mubr.msk.f32.mxu1 %vm286_vm1, %v6448_v35 }
  0x36   : > { %5657 = vmatmul.mubr.msk.f32.gmra.mxu0 %vm286_vm1, %v6465_v38 }
  0x37   : > { %5631 = vmatmul.mubr.msk.f32.gmra.mxu1 %vm286_vm1, %v6462_v37  ;;  %5659 = vmatprep.mubr.msk.f32.mxu0 %vm286_vm1, %v6471_v40 }
  0x38   : > { %5633 = vmatprep.mubr.msk.f32.mxu1 %vm286_vm1, %v6468_v39 }
  0x3a   : > { %5660 = vmatmul.mubr.msk.f32.gmra.mxu0 %vm286_vm1, %v6485_v42 }
  0x3b   : > { %5634 = vmatmul.mubr.msk.f32.gmra.mxu1 %vm286_vm1, %v6482_v41  ;;  %5662 = vmatprep.mubr.msk.f32.mxu0 %vm286_vm1, %v6491_v44 }
  0x3c   : > { %5636 = vmatprep.mubr.msk.f32.mxu1 %vm286_vm1, %v6488_v43 }
  0x3e   : > { %5663 = vmatmul.mubr.msk.f32.gmra.mxu0 %vm286_vm1, %v6505_v46 }
  0x3f   : > { %5637 = vmatmul.mubr.msk.f32.gmra.mxu1 %vm286_vm1, %v6502_v45  ;;  %5665 = vmatprep.mubr.msk.f32.mxu0 %vm286_vm1, %v6511_v48 }
  0x40   : > { %5639 = vmatprep.mubr.msk.f32.mxu1 %vm286_vm1, %v6508_v47 }
  0x42   : > { %5666 = vmatmul.mubr.msk.f32.gmra.mxu0 %vm286_vm1, %v6525_v50 }
  0x43   : > { %5640 = vmatmul.mubr.msk.f32.gmra.mxu1 %vm286_vm1, %v6522_v49  ;;  %5668 = vmatprep.mubr.msk.f32.mxu0 %vm286_vm1, %v6531_v52 }
  0x44   : > { %5642 = vmatprep.mubr.msk.f32.mxu1 %vm286_vm1, %v6528_v51 }
  0x46   : > { %5669 = vmatmul.mubr.msk.f32.gmra.mxu0 %vm286_vm1, %v6545_v54 }
  0x47   : > { %5643 = vmatmul.mubr.msk.f32.gmra.mxu1 %vm286_vm1, %v6542_v53  ;;  %5699 = vmatprep.mubr.msk.f32.mxu0 %vm286_vm1, %v4939_v56  ;;  %v4949_v56 = vld [vmem:[%s6301_s19 + $0x230] sm:$0xff] }
  0x48   : > { %5673 = vmatprep.mubr.msk.f32.mxu1 %vm286_vm1, %v4905_v55  ;;  %v4915_v55 = vld [vmem:[%s6301_s19 + $0x190] sm:$0xff] }
  0x4a   : > { %5700 = vmatmul.mubr.msk.f32.vlgmr.msra.gmra.mxu0 %vm286_vm1, %v4940_v58  ;;  %v4950_v58 = vld [vmem:[%s6301_s19 + $0x238] sm:$0xff] }
  0x4b   : > { %5674 = vmatmul.mubr.msk.f32.vlgmr.msra.gmra.mxu1 %vm286_vm1, %v4906_v57  ;;  %5750 = vmatpush3.msk.msra.mxu0 %vm335_vm0, %v6409_v28  ;;  %v4948_v28 = vld [vmem:[%s6301_s19 + $0x228] sm:$0xff]  ;;  %v4916_v57 = vld [vmem:[%s6301_s19 + $0x198] sm:$0xff] }
  0x4c   : > { %5724 = vmatpush3.msk.msra.mxu1 %vm335_vm0, %v6404_v27  ;;  %5676 = vmatprep.mubr.msk.f32.mxu1 %vm286_vm1, %v4907_v59  ;;  %v4914_v27 = vld [vmem:[%s6301_s19 + $0x188] sm:$0xff]  ;;  %v4917_v59 = vld [vmem:[%s6301_s19 + $0x1a0] sm:$0xff] }
  0x4d   : > { %5702 = vmatprep.mubr.msk.f32.mxu0 %vm286_vm1, %v4941_v60  ;;  %5775 = vmatprep.subr.msk.mxu1 %vm335_vm0, %v6564_v61  ;;  %v4951_v60 = vld [vmem:[%s6301_s19 + $0x240] sm:$0xff] }
  0x4e   : > { %5801 = vmatprep.subr.msk.mxu0 %vm335_vm0, %v6569_v62  ;;  %5703 = vmatmul.mubr.msk.f32.gmra.mxu0 %vm286_vm1, %v4942_v0  ;;  %v4952_v0 = vld [vmem:[%s6301_s19 + $0x248] sm:$0xff] }
  0x4f   : > { %5677 = vmatmul.mubr.msk.f32.gmra.mxu1 %vm286_vm1, %v4908_v63  ;;  %5705 = vmatprep.mubr.msk.f32.mxu0 %vm286_vm1, %v4943_v2  ;;  %v4918_v63 = vld [vmem:[%s6301_s19 + $0x1a8] sm:$0xff]  ;;  %v4953_v2 = vld [vmem:[%s6301_s19 + $0x250] sm:$0xff] }
  0x50   : > { %5679 = vmatprep.mubr.msk.f32.mxu1 %vm286_vm1, %v4909_v1  ;;  %v4919_v1 = vld [vmem:[%s6301_s19 + $0x1b0] sm:$0xff] }
  0x52   : > { %5706 = vmatmul.mubr.msk.f32.gmra.mxu0 %vm286_vm1, %v4944_v5  ;;  %v4954_v5 = vld [vmem:[%s6301_s19 + $0x258] sm:$0xff] }
  0x53   : > { %5680 = vmatmul.mubr.msk.f32.gmra.mxu1 %vm286_vm1, %v4910_v3  ;;  %5708 = vmatprep.mubr.msk.f32.mxu0 %vm286_vm1, %v4945_v10  ;;  %v4920_v3 = vld [vmem:[%s6301_s19 + $0x1b8] sm:$0xff]  ;;  %v4974_v10 = vld [vmem:[%s6301_s19 + $0x149] sm:$0xff] }
  0x54   : > { %5682 = vmatprep.mubr.msk.f32.mxu1 %vm286_vm1, %v4911_v9  ;;  %v4973_v9 = vld [vmem:[%s6301_s19 + $0x141] sm:$0xff] }
  0x56   : > { %5709 = vmatmul.mubr.msk.f32.gmra.mxu0 %vm286_vm1, %v4946_v22  ;;  %v4976_v22 = vld [vmem:[%s6301_s19 + $0x159] sm:$0xff] }
  0x57   : > { %5683 = vmatmul.mubr.msk.f32.gmra.mxu1 %vm286_vm1, %v4912_v21  ;;  %5711 = vmatprep.mubr.msk.f32.mxu0 %vm286_vm1, %v4947_v24  ;;  %v4975_v21 = vld [vmem:[%s6301_s19 + $0x151] sm:$0xff] }
  0x58   : > { %5685 = vmatprep.mubr.msk.f32.mxu1 %vm286_vm1, %v4913_v23  ;;  %v1617_v23 = vld [vmem:[%s6301_s19 + $0x88] sm:$0xff] }
  0x5a   : > { %5712 = vmatmul.mubr.msk.f32.gmra.mxu0 %vm286_vm1, %v4948_v28 }
  0x5b   : > { %5686 = vmatmul.mubr.msk.f32.gmra.mxu1 %vm286_vm1, %v4914_v27  ;;  %5714 = vmatprep.mubr.msk.f32.mxu0 %vm286_vm1, %v4949_v56 }
  0x5c   : > { %5688 = vmatprep.mubr.msk.f32.mxu1 %vm286_vm1, %v4915_v55 }
  0x5e   : > { %5715 = vmatmul.mubr.msk.f32.gmra.mxu0 %vm286_vm1, %v4950_v58 }
  0x5f   : > { %5689 = vmatmul.mubr.msk.f32.gmra.mxu1 %vm286_vm1, %v4916_v57  ;;  %5717 = vmatprep.mubr.msk.f32.mxu0 %vm286_vm1, %v4951_v60 }
  0x60   : > { %5691 = vmatprep.mubr.msk.f32.mxu1 %vm286_vm1, %v4917_v59 }
  0x62   : > { %5718 = vmatmul.mubr.msk.f32.gmra.mxu0 %vm286_vm1, %v4952_v0 }
  0x63   : > { %5692 = vmatmul.mubr.msk.f32.gmra.mxu1 %vm286_vm1, %v4918_v63  ;;  %5720 = vmatprep.mubr.msk.f32.mxu0 %vm286_vm1, %v4953_v2  ;;  %v6826_v2 = vld [vmem:[%s7537_s2 + $0x20] sm:$0xff] }
  0x64   : > { %5694 = vmatprep.mubr.msk.f32.mxu1 %vm286_vm1, %v4919_v1 }
  0x66   : > { %5721 = vmatmul.mubr.msk.f32.gmra.mxu0 %vm286_vm1, %v4954_v5 }
  0x67   : > { %5695 = vmatmul.mubr.msk.f32.gmra.mxu1 %vm286_vm1, %v4920_v3  ;;  %5751 = vmatprep.mubr.msk.f32.mxu0 %vm286_vm1, %v6394_v25  ;;  %v4977_v25 = vld [vmem:[%s6301_s19 + $0x161] sm:$0xff] }
  0x68   : > { %5725 = vmatprep.mubr.msk.f32.mxu1 %vm286_vm1, %v4973_v9 }
  0x6a   : > { %5752 = vmatmul.mubr.msk.f32.vlgmr.msra.gmra.mxu0 %vm286_vm1, %v6414_v29  ;;  %v4978_v29 = vld [vmem:[%s6301_s19 + $0x169] sm:$0xff] }
  0x6b   : > { %5726 = vmatmul.mubr.msk.f32.vlgmr.msra.gmra.mxu1 %vm286_vm1, %v4974_v10  ;;  %5802 = vmatpush3.msk.msra.mxu0 %vm335_vm0, %v6569_v62  ;;  %v1616_v62 = vld [vmem:[%s6301_s19 + $0x80] sm:$0xff] }
  0x6c   : > { %5776 = vmatpush3.msk.msra.mxu1 %vm335_vm0, %v6564_v61  ;;  %5728 = vmatprep.mubr.msk.f32.mxu1 %vm286_vm1, %v4975_v21  ;;  %v4979_v61 = vld [vmem:[%s6301_s19 + $0x171] sm:$0xff] }
  0x6d   : > { %5754 = vmatprep.mubr.msk.f32.mxu0 %vm286_vm1, %v6424_v31  ;;  %v4980_v31 = vld [vmem:[%s6301_s19 + $0x179] sm:$0xff] }
  0x6e   : > { %5755 = vmatmul.mubr.msk.f32.gmra.mxu0 %vm286_vm1, %v6442_v33  ;;  %v4981_v33 = vld [vmem:[%s6301_s19 + $0x181] sm:$0xff] }
  0x6f   : > { %5729 = vmatmul.mubr.msk.f32.gmra.mxu1 %vm286_vm1, %v4976_v22  ;;  %5757 = vmatprep.mubr.msk.f32.mxu0 %vm286_vm1, %v6448_v35  ;;  %v4982_v35 = vld [vmem:[%s6301_s19 + $0x189] sm:$0xff] }
  0x70   : > { %5731 = vmatprep.mubr.msk.f32.mxu1 %vm286_vm1, %v4977_v25  ;;  %v6840_v25 = vld [vmem:[%s7537_s2 + $0x28] sm:$0xff] }
  0x72   : > { %5758 = vmatmul.mubr.msk.f32.gmra.mxu0 %vm286_vm1, %v6462_v37  ;;  %v4983_v37 = vld [vmem:[%s6301_s19 + $0x191] sm:$0xff] }
  0x73   : > { %5732 = vmatmul.mubr.msk.f32.gmra.mxu1 %vm286_vm1, %v4978_v29  ;;  %5760 = vmatprep.mubr.msk.f32.mxu0 %vm286_vm1, %v6468_v39  ;;  %v4984_v39 = vld [vmem:[%s6301_s19 + $0x199] sm:$0xff] }
  0x74   : > { %5734 = vmatprep.mubr.msk.f32.mxu1 %vm286_vm1, %v4979_v61 }
  0x76   : > { %5761 = vmatmul.mubr.msk.f32.gmra.mxu0 %vm286_vm1, %v6482_v41  ;;  %v4985_v41 = vld [vmem:[%s6301_s19 + $0x1a1] sm:$0xff] }
  0x77   : > { %5735 = vmatmul.mubr.msk.f32.gmra.mxu1 %vm286_vm1, %v4980_v31  ;;  %5763 = vmatprep.mubr.msk.f32.mxu0 %vm286_vm1, %v6488_v43  ;;  %v4986_v43 = vld [vmem:[%s6301_s19 + $0x1a9] sm:$0xff] }
  0x78   : > { %5737 = vmatprep.mubr.msk.f32.mxu1 %vm286_vm1, %v4981_v33 }
  0x7a   : > { %5764 = vmatmul.mubr.msk.f32.gmra.mxu0 %vm286_vm1, %v6502_v45  ;;  %v4987_v45 = vld [vmem:[%s6301_s19 + $0x1b1] sm:$0xff] }
  0x7b   : > { %5738 = vmatmul.mubr.msk.f32.gmra.mxu1 %vm286_vm1, %v4982_v35  ;;  %5766 = vmatprep.mubr.msk.f32.mxu0 %vm286_vm1, %v6508_v47  ;;  %v4988_v47 = vld [vmem:[%s6301_s19 + $0x1b9] sm:$0xff] }
  0x7c   : > { %5740 = vmatprep.mubr.msk.f32.mxu1 %vm286_vm1, %v4983_v37 }
  0x7e   : > { %5767 = vmatmul.mubr.msk.f32.gmra.mxu0 %vm286_vm1, %v6522_v49 }
  0x7f   : > { %5741 = vmatmul.mubr.msk.f32.gmra.mxu1 %vm286_vm1, %v4984_v39  ;;  %5769 = vmatprep.mubr.msk.f32.mxu0 %vm286_vm1, %v6528_v51 }
  0x80   : > { %5743 = vmatprep.mubr.msk.f32.mxu1 %vm286_vm1, %v4985_v41 }
  0x82   : > { %5770 = vmatmul.mubr.msk.f32.gmra.mxu0 %vm286_vm1, %v6542_v53 }
  0x83   : > { %5744 = vmatmul.mubr.msk.f32.gmra.mxu1 %vm286_vm1, %v4986_v43  ;;  %5772 = vmatprep.mubr.msk.f32.mxu0 %vm286_vm1, %v1616_v62 }
  0x84   : > { %5746 = vmatprep.mubr.msk.f32.mxu1 %vm286_vm1, %v4987_v45 }
  0x86   : > { %5773 = vmatmul.mubr.msk.f32.gmra.mxu0 %vm286_vm1, %v1617_v23 }
  0x87   : > { %5747 = vmatmul.mubr.msk.f32.gmra.mxu1 %vm286_vm1, %v4988_v47  ;;  %5803 = vmatprep.mubr.msk.f32.mxu0 %vm286_vm1, %v6397_v26 }
  0x88   : > { %5777 = vmatprep.mubr.msk.f32.mxu1 %vm286_vm1, %v6315_v7  ;;  %v5040_v7 = vld [vmem:[%s6301_s19 + $0x128] sm:$0xff] }
  0x8a   : > { %5804 = vmatmul.mubr.msk.f32.vlgmr.msra.gmra.mxu0 %vm286_vm1, %v6417_v30 }
  0x8b   : > { %5778 = vmatmul.mubr.msk.f32.vlgmr.msra.gmra.mxu1 %vm286_vm1, %v6332_v11  ;;  %5806 = vmatprep.mubr.msk.f32.mxu0 %vm286_vm1, %v6427_v32  ;;  %v5078_v11 = vld [vmem:[%s7537_s2 + $0x8] sm:$0xff] }
  0x8c   : > { %5780 = vmatprep.mubr.msk.f32.mxu1 %vm286_vm1, %v6342_v13  ;;  %5827 = vmatprep.subr.mxu1 %v5078_v11  ;;  %v6194_v13 = vmov 0.0  }
  0x8d   : > { %5828 = vmatpush3.msra.mxu1 %v5078_v11  ;;  %2607 = vst.msk [vmem:[#allocation2 + $0x10] sm:$0xff] %vm2604_vm2, %v6194_v13  ;;  %2605 = vst.msk [vmem:[#allocation2] sm:$0xff] %vm2604_vm2, %v6194_v13 }
  0x8e   : > { %5807 = vmatmul.mubr.msk.f32.gmra.mxu0 %vm286_vm1, %v6445_v34  ;;  %2606 = vst.msk [vmem:[#allocation2 + $0x8] sm:$0xff] %vm2604_vm2, %v6194_v13  ;;  %2608 = vst.msk [vmem:[#allocation2 + $0x90] sm:$0xff] %vm2604_vm2, %v6194_v13 }
  0x8f   : > { %5781 = vmatmul.mubr.msk.f32.gmra.mxu1 %vm286_vm1, %v6358_v15  ;;  %5809 = vmatprep.mubr.msk.f32.mxu0 %vm286_vm1, %v6451_v36  ;;  %2609 = vst.msk [vmem:[#allocation2 + $0x98] sm:$0xff] %vm2604_vm2, %v6194_v13  ;;  %2610 = vst.msk [vmem:[#allocation2 + $0xa0] sm:$0xff] %vm2604_vm2, %v6194_v13 }
  0x90   : > { %5783 = vmatprep.mubr.msk.f32.mxu1 %vm286_vm1, %v6364_v17  ;;  %2613 = vst.msk [vmem:[#allocation2 + $0x19] sm:$0xff] %vm2604_vm2, %v6194_v13  ;;  %2615 = vst.msk [vmem:[#allocation2 + $0x29] sm:$0xff] %vm2604_vm2, %v6194_v13 }
  0x91   : > { %2617 = vst.msk [vmem:[#allocation2 + $0x39] sm:$0xff] %vm2604_vm2, %v6194_v13  ;;  %2619 = vst.msk [vmem:[#allocation2 + $0x49] sm:$0xff] %vm2604_vm2, %v6194_v13 }
  0x92   : > { %5810 = vmatmul.mubr.msk.f32.gmra.mxu0 %vm286_vm1, %v6465_v38  ;;  %2621 = vst.msk [vmem:[#allocation2 + $0x59] sm:$0xff] %vm2604_vm2, %v6194_v13  ;;  %2623 = vst.msk [vmem:[#allocation2 + $0x69] sm:$0xff] %vm2604_vm2, %v6194_v13  ;;  %v5111_v38 = vld [vmem:[%s7537_s2 + $0x10] sm:$0xff] }
  0x93   : > { %5784 = vmatmul.mubr.msk.f32.gmra.mxu1 %vm286_vm1, %v6378_v19  ;;  %5812 = vmatprep.mubr.msk.f32.mxu0 %vm286_vm1, %v6471_v40  ;;  %2625 = vst.msk [vmem:[#allocation2 + $0x79] sm:$0xff] %vm2604_vm2, %v6194_v13  ;;  %2627 = vst.msk [vmem:[#allocation2 + $0x89] sm:$0xff] %vm2604_vm2, %v6194_v13  ;;  %v5128_v40 = vld [vmem:[%s7537_s2 + $0x18] sm:$0xff] }
  0x94   : > { %5786 = vmatprep.mubr.msk.f32.mxu1 %vm286_vm1, %v6305_v4  ;;  %v5039_v4 = vld [vmem:[%s6301_s19 + $0x120] sm:$0xff]  ;;  %5879 = vmatprep.subr.mxu1 %v5111_v38 }
  0x95   : > { %v2628_v15 = vld [vmem:[#allocation2] sm:$0xff]  ;;  %v2629_v17 = vld [vmem:[#allocation2 + $0x8] sm:$0xff] }
  0x96   : > { %5813 = vmatmul.mubr.msk.f32.gmra.mxu0 %vm286_vm1, %v6485_v42 }
  0x97   : > { %5787 = vmatmul.mubr.msk.f32.gmra.mxu1 %vm286_vm1, %v6312_v6  ;;  %5815 = vmatprep.mubr.msk.f32.mxu0 %vm286_vm1, %v6491_v44  ;;  %v2076_v6 = vld [vmem:[%s6301_s19 + $0x81] sm:$0xff] }
  0x98   : > { %5789 = vmatprep.mubr.msk.f32.mxu1 %vm286_vm1, %v6318_v8  ;;  %v2077_v8 = vld [vmem:[%s6301_s19 + $0x89] sm:$0xff] }
  0x9a   : > { %5816 = vmatmul.mubr.msk.f32.gmra.mxu0 %vm286_vm1, %v6505_v46 }
  0x9b   : > { %5790 = vmatmul.mubr.msk.f32.gmra.mxu1 %vm286_vm1, %v6335_v12  ;;  %5818 = vmatprep.mubr.msk.f32.mxu0 %vm286_vm1, %v6511_v48  ;;  %v2644_v12 = vld [vmem:[%s7537_s2] sm:$0xff] }
  0x9c   : > { %5792 = vmatprep.mubr.msk.f32.mxu1 %vm286_vm1, %v6345_v14  ;;  %5853 = vmatprep.subr.mxu0 %v2644_v12  ;;  %v2645_v14 = vld [vmem:[#allocation2 + $0x1] sm:$0xff] }
  0x9d   : > { %5854 = vmatpush3.msra.mxu0 %v2644_v12 }
  0x9e   : > { %5819 = vmatmul.mubr.msk.f32.gmra.mxu0 %vm286_vm1, %v6525_v50  ;;  %5905 = vmatprep.subr.mxu0 %v5128_v40 }
  0x9f   : > { %5793 = vmatmul.mubr.msk.f32.gmra.mxu1 %vm286_vm1, %v6361_v16  ;;  %5821 = vmatprep.mubr.msk.f32.mxu0 %vm286_vm1, %v6531_v52  ;;  %v2646_v16 = vld [vmem:[#allocation2 + $0x9] sm:$0xff] }
  0xa0   : > { %5795 = vmatprep.mubr.msk.f32.mxu1 %vm286_vm1, %v6367_v18 }
  0xa2   : > { %5822 = vmatmul.mubr.msk.f32.gmra.mxu0 %vm286_vm1, %v6545_v54 }
  0xa3   : > { %5796 = vmatmul.mubr.msk.f32.gmra.mxu1 %vm286_vm1, %v6381_v20  ;;  %5824 = vmatprep.mubr.msk.f32.mxu0 %vm286_vm1, %v2076_v6 }
  0xa4   : > { %5798 = vmatprep.mubr.msk.f32.mxu1 %vm286_vm1, %v5039_v4 }
  0xa6   : > { %5825 = vmatmul.mubr.msk.f32.gmra.mxu0 %vm286_vm1, %v2077_v8 }
  0xa7   : > { %5799 = vmatmul.mubr.msk.f32.gmra.mxu1 %vm286_vm1, %v5040_v7  ;;  %5855 = vmatprep.mubr.msk.f32.mxu0 %vm2604_vm2, %v2628_v15 }
  0xa8   : > { %5829 = vmatprep.mubr.msk.f32.mxu1 %vm2604_vm2, %v2645_v14 }
  0xaa   : > { %5856 = vmatmul.mubr.msk.f32.vlgmr.msra.gmra.mxu0 %vm2604_vm2, %v2629_v17 }
  0xab   : > { %5830 = vmatmul.mubr.msk.f32.vlgmr.msra.gmra.mxu1 %vm2604_vm2, %v2646_v16  ;;  %5906 = vmatpush3.msra.mxu0 %v5128_v40 }
  0xac   : > { %5880 = vmatpush3.msra.mxu1 %v5111_v38  ;;  %5957 = vmatprep.subr.mxu0 %v6840_v25 }
  0xad   : > { %5931 = vmatprep.subr.mxu1 %v6826_v2 }
  0xda   : > { %v5597_v18 = vpop.f32.mrf.mxu0 }
  0xdb   : > { %v5609_v19 = vpop.f32.mrf.mxu1 }
  0xdc   : > { %v6789_v20 = vpop.f32.mrf.mxu0 }
  0xdd   : > { %v6791_v26 = vpop.f32.mrf.mxu1 }
  0xde   : > { %v5600_v30 = vpop.f32.mrf.mxu0 }
  0xdf   : > { %v5612_v32 = vpop.f32.mrf.mxu1 }
  0xe0   : > { %v6793_v34 = vpop.f32.mrf.mxu0 }
  0xe1   : > { %v6795_v36 = vpop.f32.mrf.mxu1 }
  0xe2   : > { %v5603_v42 = vpop.f32.mrf.mxu0 }
  0xe3   : > { %v5615_v44 = vpop.f32.mrf.mxu1 }
  0xe4   : > { %v6803_v46 = vpop.f32.mrf.mxu0 }
  0xe5   : > { %v6805_v48 = vpop.f32.mrf.mxu1 }
  0xe6   : > { %v5606_v49 = vpop.f32.mrf.mxu0 }
  0xe7   : > { %v5618_v50 = vpop.f32.mrf.mxu1 }
  0xe8   : > { %v6807_v51 = vpop.f32.mrf.mxu0 }
  0xe9   : > { %v6809_v52 = vpop.f32.mrf.mxu1 }
  0xea   : > { %v5649_v54 = vpop.f32.mrf.mxu0 }
  0xeb   : > { %v5623_v53 = vpop.f32.mrf.mxu1 }
  0xec   : > { %v6813_v27 = vpop.f32.mrf.mxu0 }
  0xed   : > { %v6811_v24 = vpop.f32.mrf.mxu1 }
  0xee   : > { %v5652_v55 = vpop.f32.mrf.mxu0 }
  0xef   : > { %v5626_v28 = vpop.f32.mrf.mxu1 }
  0xf0   : > { %v6817_v57 = vpop.f32.mrf.mxu0 }
  0xf1   : > { %v6815_v56 = vpop.f32.mrf.mxu1 }
  0xf2   : > { %v5655_v59 = vpop.f32.mrf.mxu0 }
  0xf3   : > { %v5629_v58 = vpop.f32.mrf.mxu1 }
  0xf4   : > { %v6821_v63 = vpop.f32.mrf.mxu0 }
  0xf5   : > { %v6819_v60 = vpop.f32.mrf.mxu1 }
  0xf6   : > { %v5658_v1 = vpop.f32.mrf.mxu0 }
  0xf7   : > { %v5632_v0 = vpop.f32.mrf.mxu1 }
  0xf8   : > { %v6830_v5 = vpop.f32.mrf.mxu0 }
  0xf9   : > { %v6828_v3 = vpop.f32.mrf.mxu1 }
  0xfa   : > { %v5661_v10 = vpop.f32.mrf.mxu0 }
  0xfb   : > { %v5635_v9 = vpop.f32.mrf.mxu1 }
  0xfc   : > { %v6835_v22 = vpop.f32.mrf.mxu0 }
  0xfd   : > { %v6833_v21 = vpop.f32.mrf.mxu1 }
  0xfe   : > { %v5664_v61 = vpop.f32.mrf.mxu0 }
  0xff   : > { %v5638_v29 = vpop.f32.mrf.mxu1 }
 0x100   : > { %v6845_v33 = vpop.f32.mrf.mxu0 }
 0x101   : > { %v6843_v31 = vpop.f32.mrf.mxu1 }
 0x102   : > { %v5667_v37 = vpop.f32.mrf.mxu0 }
 0x103   : > { %v5641_v35 = vpop.f32.mrf.mxu1 }
 0x104   : > { %v6849_v41 = vpop.f32.mrf.mxu0 }
 0x105   : > { %v6847_v39 = vpop.f32.mrf.mxu1 }
 0x106   : > { %v5670_v45 = vpop.f32.mrf.mxu0 }
 0x107   : > { %v5644_v43 = vpop.f32.mrf.mxu1 }
 0x108   : > { %v6853_v47 = vpop.f32.mrf.mxu0 }
 0x109   : > { %v6851_v62 = vpop.f32.mrf.mxu1 }
 0x10a   : > { %v5701_v4 = vpop.f32.mrf.mxu0 }
 0x10b   : > { %v5675_v23 = vpop.f32.mrf.mxu1 }
 0x10c   : > { %v6855_v7 = vpop.f32.mrf.mxu0 }
 0x10d   : > { %v1046_v6 = vpop.f32.mrf.mxu1 }
 0x10e   : > { %v5704_v11 = vpop.f32.mrf.mxu0 }
 0x10f   : > { %v5678_v8 = vpop.f32.mrf.mxu1 }
 0x110   : > { %v6857_v13 = vpop.f32.mrf.mxu0 }
 0x111   : > { %v1056_v12 = vpop.f32.mrf.mxu1 }
 0x112   : > { %v5707_v15 = vpop.f32.mrf.mxu0 }
 0x113   : > { %v5681_v14 = vpop.f32.mrf.mxu1 }
 0x114   : > { %v6861_v17 = vpop.f32.mrf.mxu0 }
 0x115   : > { %v6859_v16 = vpop.f32.mrf.mxu1 }
 0x116   : > { %v5710_v19 = vpop.f32.mrf.mxu0 }
 0x117   : > { %v5684_v18 = vpop.f32.mrf.mxu1 }
 0x118   : > { %v6865_v32 = vpop.f32.mrf.mxu0 }
 0x119   : > { %v6863_v30 = vpop.f32.mrf.mxu1 }
 0x11a   : > { %v5713_v40 = vpop.f32.mrf.mxu0 }
 0x11b   : > { %v5687_v38 = vpop.f32.mrf.mxu1 }
 0x11c   : > { %v6869_v44 = vpop.f32.mrf.mxu0 }
 0x11d   : > { %v6867_v42 = vpop.f32.mrf.mxu1 }
 0x11e   : > { %v5716_v50 = vpop.f32.mrf.mxu0 }
 0x11f   : > { %v5690_v49 = vpop.f32.mrf.mxu1 }
 0x120   : > { %v6873_v54 = vpop.f32.mrf.mxu0 }
 0x121   : > { %v6871_v53 = vpop.f32.mrf.mxu1 }
 0x122   : > { %v5719_v55 = vpop.f32.mrf.mxu0 }
 0x123   : > { %v5693_v28 = vpop.f32.mrf.mxu1 }
 0x124   : > { %v6877_v59 = vpop.f32.mrf.mxu0  ;;  %v602_v28 = vadd.f32 %v6811_v24, %v6789_v20  ;;  %v622_v24 = vadd.f32 %v6819_v60, %v6803_v46 }
 0x125   : > { %v6875_v58 = vpop.f32.mrf.mxu1 }
 0x126   : > { %v5722_v1 = vpop.f32.mrf.mxu0 }
 0x127   : > { %v5696_v0 = vpop.f32.mrf.mxu1 }
 0x128   : > { %v6881_v10 = vpop.f32.mrf.mxu0 }
 0x129   : > { %v6879_v9 = vpop.f32.mrf.mxu1 }
 0x12a   : > { %v5753_v61 = vpop.f32.mrf.mxu0 }
 0x12b   : > { %v5727_v29 = vpop.f32.mrf.mxu1  ;;  %v894_v61 = vadd.f32 %v6813_v27, %v602_v28 }
 0x12c   : > { %v1737_v37 = vpop.f32.mrf.mxu0 }
 0x12d   : > { %v1507_v35 = vpop.f32.mrf.mxu1 }
 0x12e   : > { %v5756_v45 = vpop.f32.mrf.mxu0 }
 0x12f   : > { %v5730_v43 = vpop.f32.mrf.mxu1 }
 0x130   : > { %v1747_v4 = vpop.f32.mrf.mxu0  ;;  %v612_v43 = vadd.f32 %v6815_v56, %v6793_v34 }
 0x131   : > { %v1517_v23 = vpop.f32.mrf.mxu1 }
 0x132   : > { %v5759_v11 = vpop.f32.mrf.mxu0  ;;  %v896_v20 = vadd.f32 %v6817_v57, %v612_v43 }
 0x133   : > { %v5733_v8 = vpop.f32.mrf.mxu1  ;;  %v1125_v11 = vadd.f32 %v1046_v6, %v894_v61  ;;  %v632_v6 = vadd.f32 %v6828_v3, %v6807_v51 }
 0x134   : > { %v6883_v15 = vpop.f32.mrf.mxu0  ;;  %v1127_v28 = vadd.f32 %v1056_v12, %v896_v20  ;;  %v642_v12 = vadd.f32 %v6833_v21, %v6791_v26 }
 0x135   : > { %v1527_v14 = vpop.f32.mrf.mxu1  ;;  %v1356_v27 = vadd.f32 %v6855_v7, %v1125_v11  ;;  %v900_v7 = vadd.f32 %v6830_v5, %v632_v6 }
 0x136   : > { %v5762_v19 = vpop.f32.mrf.mxu0  ;;  %v1358_v46 = vadd.f32 %v6857_v13, %v1127_v28  ;;  %v652_v13 = vadd.f32 %v6843_v31, %v6795_v36  ;;  %v902_v26 = vadd.f32 %v6835_v22, %v642_v12 }
 0x137   : > { %v5736_v18 = vpop.f32.mrf.mxu1 }
 0x138   : > { %v6885_v40 = vpop.f32.mrf.mxu0  ;;  %v1588_v11 = vadd.f32 %v1517_v23, %v1358_v46  ;;  %v1133_v28 = vadd.f32 %v6867_v42, %v902_v26 }
 0x139   : > { %v1537_v38 = vpop.f32.mrf.mxu1 }
 0x13a   : > { %v5765_v50 = vpop.f32.mrf.mxu0  ;;  %v1818_v21 = vadd.f32 %v1747_v4, %v1588_v11 }
 0x13b   : > { %v5739_v49 = vpop.f32.mrf.mxu1 }
 0x13c   : > { %v6891_v0 = vpop.f32.mrf.mxu0 }
 0x13d   : > { %v6889_v55 = vpop.f32.mrf.mxu1 }
 0x13e   : > { %v5768_v29 = vpop.f32.mrf.mxu0 }
 0x13f   : > { %v5742_v1 = vpop.f32.mrf.mxu1  ;;  %v1586_v29 = vadd.f32 %v1507_v35, %v1356_v27  ;;  %v1131_v35 = vadd.f32 %v6863_v30, %v900_v7 }
 0x140   : > { %v6898_v8 = vpop.f32.mrf.mxu0  ;;  %v898_v1 = vadd.f32 %v6821_v63, %v622_v24 }
 0x141   : > { %v6896_v45 = vpop.f32.mrf.mxu1  ;;  %v1816_v63 = vadd.f32 %v1737_v37, %v1586_v29  ;;  %v1362_v30 = vadd.f32 %v6865_v32, %v1131_v35  ;;  %v1364_v32 = vadd.f32 %v6869_v44, %v1133_v28 }
 0x142   : > { %v5771_v19 = vpop.f32.mrf.mxu0  ;;  %v1129_v60 = vadd.f32 %v6859_v16, %v898_v1  ;;  %v6927_v16 = vld [vmem:[%s7539_s4] ss:$0 sm:$0xff] }
 0x143   : > { %v5745_v18 = vpop.f32.mrf.mxu1  ;;  %v1592_v4 = vadd.f32 %v1537_v38, %v1362_v30  ;;  %v1594_v7 = vadd.f32 %v6889_v55, %v1364_v32  ;;  %v6975_v30 = vld [vmem:[#allocation2 + $0x29] sm:$0xff] }
 0x144   : > { %v6905_v50 = vpop.f32.mrf.mxu0  ;;  %v1360_v3 = vadd.f32 %v6861_v17, %v1129_v60 }
 0x145   : > { %v6903_v49 = vpop.f32.mrf.mxu1 }
 0x146   : > { %v5774_v56 = vpop.f32.mrf.mxu0  ;;  %v1590_v37 = vadd.f32 %v1527_v14, %v1360_v3 }
 0x147   : > { %v5748_v34 = vpop.f32.mrf.mxu1  ;;  %v662_v56 = vadd.f32 %v6847_v39, %v6805_v48  ;;  %v672_v39 = vadd.f32 %v6851_v62, %v6809_v52 }
 0x148   : > { %v6913_v57 = vpop.f32.mrf.mxu0  ;;  %v904_v34 = vadd.f32 %v6845_v33, %v652_v13  ;;  %v1820_v22 = vadd.f32 %v6883_v15, %v1590_v37 }
 0x149   : > { %v6911_v61 = vpop.f32.mrf.mxu1  ;;  %v906_v48 = vadd.f32 %v6849_v41, %v662_v56  ;;  %v908_v52 = vadd.f32 %v6853_v47, %v672_v39 }
 0x14a   : > { %v5805_v18 = vpop.f32.mrf.mxu0  ;;  %v1135_v42 = vadd.f32 %v6871_v53, %v904_v34 }
 0x14b   : > { %v5779_v43 = vpop.f32.mrf.mxu1  ;;  %v1822_v18 = vadd.f32 %v6885_v40, %v1592_v4  ;;  %v1137_v53 = vadd.f32 %v6875_v58, %v906_v48  ;;  %v1824_v40 = vadd.f32 %v6891_v0, %v1594_v7  ;;  %v6953_v58 = vld [vmem:[#allocation2 + $0x19] sm:$0xff]  ;;  %v1139_v47 = vadd.f32 %v6879_v9, %v908_v52  ;;  %v7015_v7 = vld [vmem:[#allocation2 + $0x49] sm:$0xff] }
 0x14c   : > { %v2197_v51 = vpop.f32.mrf.mxu0  ;;  %v7033_v52 = vld [vmem:[#allocation2 + $0x59] sm:$0xff] }
 0x14d   : > { %v1967_v19 = vpop.f32.mrf.mxu1  ;;  %v1368_v13 = vadd.f32 %v6877_v59, %v1137_v53 }
 0x14e   : > { %v2046_v20 = vadd.f32 %v1967_v19, %v1816_v63  ;;  %v5808_v24 = vpop.f32.mrf.mxu0  ;;  %v1366_v19 = vadd.f32 %v6873_v54, %v1135_v42 }
 0x14f   : > { %v5782_v5 = vpop.f32.mrf.mxu1 }
 0x150   : > { %v2276_v23 = vadd.f32 %v2197_v51, %v2046_v20  ;;  %v2207_v17 = vpop.f32.mrf.mxu0  ;;  %v1596_v55 = vadd.f32 %v6896_v45, %v1366_v19 }
 0x151   : > { %v1977_v27 = vpop.f32.mrf.mxu1 }
 0x152   : > { %v2524_v36 = vadd.f32 %v6927_v16, %v2276_v23  ;;  %v2048_v31 = vadd.f32 %v1977_v27, %v1818_v21  ;;  %v5811_v6 = vpop.f32.mrf.mxu0  ;;  %v1826_v9 = vadd.f32 %v6898_v8, %v1596_v55  ;;  %v1598_v23 = vadd.f32 %v6903_v49, %v1368_v13 }
 0x153   : > { %v5785_v1 = vpop.f32.mrf.mxu1 }
 0x154   : > { %v2540_v14 = vmax.f32 %v2524_v36, 0.0  ;;  %v2278_v29 = vadd.f32 %v2207_v17, %v2048_v31  ;;  %v2217_v60 = vpop.f32.mrf.mxu0  ;;  %v1370_v1 = vadd.f32 %v6881_v10, %v1139_v47  ;;  %v1828_v10 = vadd.f32 %v6905_v50, %v1598_v23  ;;  %v3033_v47 = vld [vmem:[#allocation2 + $0x2] sm:$0xff]  ;;  %v5179_v23 = vld [vmem:[%s7537_s2 + $0x30] sm:$0xff] }
 0x155   : > { %v1987_v46 = vpop.f32.mrf.mxu1 }
 0x156   : > { %2612 = vst.msk [vmem:[#allocation2 + $0x11] sm:$0xff] %vm2604_vm2, %v2540_v14  ;;  %v2526_v33 = vadd.f32 %v6927_v16, %v2278_v29  ;;  %v2050_v43 = vadd.f32 %v1987_v46, %v1820_v22  ;;  %v5814_v38 = vpop.f32.mrf.mxu0  ;;  %v1600_v4 = vadd.f32 %v6911_v61, %v1370_v1  ;;  %v6996_v46 = vld [vmem:[#allocation2 + $0x39] sm:$0xff] }
 0x157   : > { %v5788_v15 = vpop.f32.mrf.mxu1 }
 0x158   : > { %v2542_v12 = vmax.f32 %v2526_v33, 0.0  ;;  %v2280_v44 = vadd.f32 %v2217_v60, %v2050_v43  ;;  %v2227_v11 = vpop.f32.mrf.mxu0  ;;  %v1830_v15 = vadd.f32 %v6913_v57, %v1600_v4 }
 0x159   : > { %v1997_v63 = vpop.f32.mrf.mxu1 }
 0x15a   : > { %2614 = vst.msk [vmem:[#allocation2 + $0x21] sm:$0xff] %vm2604_vm2, %v2542_v12  ;;  %v2528_v41 = vadd.f32 %v6927_v16, %v2280_v44  ;;  %v2052_v51 = vadd.f32 %v1997_v63, %v1822_v18  ;;  %v5817_v3 = vpop.f32.mrf.mxu0 }
 0x15b   : > { %v5791_v62 = vpop.f32.mrf.mxu1 }
 0x15c   : > { %v2544_v35 = vmax.f32 %v2528_v41, 0.0  ;;  %v2282_v20 = vadd.f32 %v2227_v11, %v2052_v51  ;;  %v2237_v5 = vpop.f32.mrf.mxu0 }
 0x15d   : > { %v2007_v54 = vpop.f32.mrf.mxu1  ;;  %v6956_v24 = vld [vmem:[#allocation2 + $0x11] sm:$0xff] }
 0x15e   : > { %v6958_v26 = vld [vmem:[#allocation2 + $0x10] sm:$0xff]  ;;  %v6960_v21 = vld [vmem:[#allocation2 + $0x18] sm:$0xff]  ;;  %2616 = vst.msk [vmem:[#allocation2 + $0x31] sm:$0xff] %vm2604_vm2, %v2544_v35  ;;  %v2530_v0 = vadd.f32 %v6927_v16, %v2282_v20  ;;  %v2054_v45 = vadd.f32 %v2007_v54, %v1824_v40  ;;  %5832 = vmatprep.mubr.msk.f32.mxu1 %vm2604_vm2, %v6956_v24  ;;  %v5820_v37 = vpop.f32.mrf.mxu0 }
 0x15f   : > { %5858 = vmatprep.mubr.msk.f32.mxu0 %vm2604_vm2, %v6958_v26  ;;  %v5794_v59 = vpop.f32.mrf.mxu1  ;;  %5833 = vmatmul.mubr.msk.f32.gmra.mxu1 %vm2604_vm2, %v6953_v58  ;;  %v7051_v20 = vld [vmem:[#allocation2 + $0x69] sm:$0xff] }
 0x160   : > { %5859 = vmatmul.mubr.msk.f32.gmra.mxu0 %vm2604_vm2, %v6960_v21  ;;  %v2546_v27 = vmax.f32 %v2530_v0, 0.0  ;;  %v2284_v17 = vadd.f32 %v2237_v5, %v2054_v45  ;;  %v2247_v36 = vpop.f32.mrf.mxu0  ;;  %v7068_v5 = vld [vmem:[#allocation2 + $0x79] sm:$0xff]  ;;  %v3034_v37 = vld [vmem:[#allocation2 + $0xa] sm:$0xff] }
 0x161   : > { %v2017_v28 = vpop.f32.mrf.mxu1  ;;  %v6977_v31 = vld [vmem:[#allocation2 + $0x21] sm:$0xff] }
 0x162   : > { %v6979_v34 = vld [vmem:[#allocation2 + $0x20] sm:$0xff]  ;;  %v6981_v56 = vld [vmem:[#allocation2 + $0x28] sm:$0xff]  ;;  %2618 = vst.msk [vmem:[#allocation2 + $0x41] sm:$0xff] %vm2604_vm2, %v2546_v27  ;;  %v2532_v8 = vadd.f32 %v6927_v16, %v2284_v17  ;;  %v2056_v6 = vadd.f32 %v2017_v28, %v1826_v9  ;;  %5835 = vmatprep.mubr.msk.f32.mxu1 %vm2604_vm2, %v6977_v31  ;;  %v5823_v22 = vpop.f32.mrf.mxu0  ;;  %v3035_v9 = vld [vmem:[#allocation2 + $0x12] sm:$0xff] }
 0x163   : > { %5861 = vmatprep.mubr.msk.f32.mxu0 %vm2604_vm2, %v6979_v34  ;;  %v5797_v49 = vpop.f32.mrf.mxu1  ;;  %5836 = vmatmul.mubr.msk.f32.gmra.mxu1 %vm2604_vm2, %v6975_v30  ;;  %v5196_v27 = vld [vmem:[%s7537_s2 + $0x38] sm:$0xff] }
 0x164   : > { %5862 = vmatmul.mubr.msk.f32.gmra.mxu0 %vm2604_vm2, %v6981_v56  ;;  %v2548_v14 = vmax.f32 %v2532_v8, 0.0  ;;  %v2286_v29 = vadd.f32 %v2247_v36, %v2056_v6  ;;  %v2257_v32 = vpop.f32.mrf.mxu0 }
 0x165   : > { %v2027_v60 = vpop.f32.mrf.mxu1  ;;  %v6998_v42 = vld [vmem:[#allocation2 + $0x31] sm:$0xff] }
 0x166   : > { %v7000_v33 = vld [vmem:[#allocation2 + $0x30] sm:$0xff]  ;;  %v7002_v43 = vld [vmem:[#allocation2 + $0x38] sm:$0xff]  ;;  %2620 = vst.msk [vmem:[#allocation2 + $0x51] sm:$0xff] %vm2604_vm2, %v2548_v14  ;;  %v2534_v48 = vadd.f32 %v6927_v16, %v2286_v29  ;;  %v2058_v39 = vadd.f32 %v2027_v60, %v1828_v10  ;;  %5838 = vmatprep.mubr.msk.f32.mxu1 %vm2604_vm2, %v6998_v42  ;;  %v5826_v61 = vpop.f32.mrf.mxu0 }
 0x167   : > { %5864 = vmatprep.mubr.msk.f32.mxu0 %vm2604_vm2, %v7000_v33  ;;  %v5800_v50 = vpop.f32.mrf.mxu1  ;;  %5839 = vmatmul.mubr.msk.f32.gmra.mxu1 %vm2604_vm2, %v6996_v46  ;;  %v5234_v61 = vld [vmem:[%s6301_s19 + $0x200] sm:$0xff] }
 0x168   : > { %5865 = vmatmul.mubr.msk.f32.gmra.mxu0 %vm2604_vm2, %v7002_v43  ;;  %v2550_v38 = vmax.f32 %v2534_v48, 0.0  ;;  %v2288_v18 = vadd.f32 %v2257_v32, %v2058_v39  ;;  %v2267_v63 = vpop.f32.mrf.mxu0  ;;  %v5213_v32 = vld [vmem:[%s7537_s2 + $0x40] sm:$0xff]  ;;  %v3470_v39 = vld [vmem:[#allocation2 + $0x89] sm:$0xff] }
 0x169   : > { %v2037_v12 = vpop.f32.mrf.mxu1  ;;  %v7017_v44 = vld [vmem:[#allocation2 + $0x41] sm:$0xff]  ;;  %v7246_v50 = vld [vmem:[#allocation2 + $0x8a] sm:$0xff] }
 0x16a   : > { %v7019_v53 = vld [vmem:[#allocation2 + $0x40] sm:$0xff]  ;;  %v7021_v11 = vld [vmem:[#allocation2 + $0x48] sm:$0xff]  ;;  %2622 = vst.msk [vmem:[#allocation2 + $0x61] sm:$0xff] %vm2604_vm2, %v2550_v38  ;;  %v2536_v19 = vadd.f32 %v6927_v16, %v2288_v18  ;;  %v2060_v41 = vadd.f32 %v2037_v12, %v1830_v15  ;;  %5841 = vmatprep.mubr.msk.f32.mxu1 %vm2604_vm2, %v7017_v44  ;;  %v5857_v60 = vpop.f32.mrf.mxu0  ;;  %v5236_v38 = vld [vmem:[%s6301_s19 + $0x210] sm:$0xff] }
 0x16b   : > { %5867 = vmatprep.mubr.msk.f32.mxu0 %vm2604_vm2, %v7019_v53  ;;  %5842 = vmatmul.mubr.msk.f32.gmra.mxu1 %vm2604_vm2, %v7015_v7  ;;  %v7122_v17 = vld [vmem:[#allocation2 + $0x3a] sm:$0xff]  ;;  %v7128_v28 = vld [vmem:[#allocation2 + $0x42] sm:$0xff]  ;;  %v5831_v29 = vpop.f32.mrf.mxu1 }
 0x16c   : > { %5868 = vmatmul.mubr.msk.f32.gmra.mxu0 %vm2604_vm2, %v7021_v11  ;;  %v2552_v57 = vmax.f32 %v2536_v19, 0.0  ;;  %v2290_v51 = vadd.f32 %v2267_v63, %v2060_v41  ;;  %v4526_v48 = vld [vmem:[%s7538_s3] sm:$0xf]  ;;  %v5235_v15 = vld [vmem:[%s6301_s19 + $0x208] sm:$0xff]  ;;  %v5237_v18 = vld [vmem:[%s6301_s19 + $0x218] sm:$0xff] }
 0x16d   : > { %v7035_v62 = vld [vmem:[#allocation2 + $0x51] sm:$0xff]  ;;  %v5239_v12 = vld [vmem:[%s6301_s19 + $0x228] sm:$0xff]  ;;  %v5242_v63 = vld [vmem:[%s6301_s19 + $0x240] sm:$0xff] }
 0x16e   : > { %v7037_v3 = vld [vmem:[#allocation2 + $0x50] sm:$0xff]  ;;  %v7039_v40 = vld [vmem:[#allocation2 + $0x58] sm:$0xff]  ;;  %2624 = vst.msk [vmem:[#allocation2 + $0x71] sm:$0xff] %vm2604_vm2, %v2552_v57  ;;  %v2538_v55 = vadd.f32 %v6927_v16, %v2290_v51  ;;  %5844 = vmatprep.mubr.msk.f32.mxu1 %vm2604_vm2, %v7035_v62 }
 0x16f   : > { %5870 = vmatprep.mubr.msk.f32.mxu0 %vm2604_vm2, %v7037_v3  ;;  %5845 = vmatmul.mubr.msk.f32.gmra.mxu1 %vm2604_vm2, %v7033_v52  ;;  %v7134_v36 = vld [vmem:[#allocation2 + $0x4a] sm:$0xff]  ;;  %v7140_v1 = vld [vmem:[#allocation2 + $0x52] sm:$0xff]  ;;  %v4314_v57 = vld [vmem:[#allocation2 + $0x9a] sm:$0xff] }
 0x170   : > { %5871 = vmatmul.mubr.msk.f32.gmra.mxu0 %vm2604_vm2, %v7039_v40  ;;  %v2554_v35 = vmax.f32 %v2538_v55, 0.0  ;;  %v4313_v19 = vld [vmem:[#allocation2 + $0x92] sm:$0xff] }
 0x171   : > { %v7053_v13 = vld [vmem:[#allocation2 + $0x61] sm:$0xff]  ;;  %v5244_v41 = vld [vmem:[%s6301_s19 + $0x250] sm:$0xff]  ;;  %v5245_v51 = vld [vmem:[%s6301_s19 + $0x258] sm:$0xff] }
 0x172   : > { %v7055_v54 = vld [vmem:[#allocation2 + $0x60] sm:$0xff]  ;;  %v7057_v16 = vld [vmem:[#allocation2 + $0x68] sm:$0xff]  ;;  %2626 = vst.msk [vmem:[#allocation2 + $0x81] sm:$0xff] %vm2604_vm2, %v2554_v35  ;;  %5847 = vmatprep.mubr.msk.f32.mxu1 %vm2604_vm2, %v7053_v13 }
 0x173   : > { %5873 = vmatprep.mubr.msk.f32.mxu0 %vm2604_vm2, %v7055_v54  ;;  %5848 = vmatmul.mubr.msk.f32.gmra.mxu1 %vm2604_vm2, %v7051_v20  ;;  %v7146_v8 = vld [vmem:[#allocation2 + $0x5a] sm:$0xff]  ;;  %v7152_v6 = vld [vmem:[#allocation2 + $0x62] sm:$0xff] }
 0x174   : > { %5874 = vmatmul.mubr.msk.f32.gmra.mxu0 %vm2604_vm2, %v7057_v16 }
 0x175   : > { %v7070_v0 = vld [vmem:[#allocation2 + $0x71] sm:$0xff] }
 0x176   : > { %v7072_v45 = vld [vmem:[#allocation2 + $0x70] sm:$0xff]  ;;  %v7074_v59 = vld [vmem:[#allocation2 + $0x78] sm:$0xff]  ;;  %5850 = vmatprep.mubr.msk.f32.mxu1 %vm2604_vm2, %v7070_v0 }
 0x177   : > { %5876 = vmatprep.mubr.msk.f32.mxu0 %vm2604_vm2, %v7072_v45  ;;  %5851 = vmatmul.mubr.msk.f32.gmra.mxu1 %vm2604_vm2, %v7068_v5  ;;  %v7158_v49 = vld [vmem:[#allocation2 + $0x6a] sm:$0xff]  ;;  %v7164_v22 = vld [vmem:[#allocation2 + $0x72] sm:$0xff] }
 0x178   : > { %5877 = vmatmul.mubr.msk.f32.gmra.mxu0 %vm2604_vm2, %v7074_v59  ;;  %5881 = vmatprep.mubr.msk.f32.mxu1 %vm2604_vm2, %v3033_v47 }
 0x179   : > { %5907 = vmatprep.mubr.msk.f32.mxu0 %vm2604_vm2, %v6958_v26  ;;  %v3036_v26 = vld [vmem:[#allocation2 + $0x1a] sm:$0xff]  ;;  %v7174_v14 = vld [vmem:[#allocation2 + $0x88] sm:$0xff] }
 0x17a   : > { %v7166_v10 = vld [vmem:[#allocation2 + $0x80] sm:$0xff] }
 0x17b   : > { %5882 = vmatmul.mubr.msk.f32.vlgmr.msra.gmra.mxu1 %vm2604_vm2, %v3034_v37  ;;  %v7172_v4 = vld [vmem:[#allocation2 + $0x7a] sm:$0xff] }
 0x17c   : > { %5908 = vmatmul.mubr.msk.f32.vlgmr.msra.gmra.mxu0 %vm2604_vm2, %v6960_v21  ;;  %5932 = vmatpush3.msra.mxu1 %v6826_v2  ;;  %v7104_v21 = vld [vmem:[#allocation2 + $0x22] sm:$0xff]  ;;  %v7110_v2 = vld [vmem:[#allocation2 + $0x2a] sm:$0xff] }
 0x17d   : > { %5884 = vmatprep.mubr.msk.f32.mxu1 %vm2604_vm2, %v3035_v9  ;;  %5910 = vmatprep.mubr.msk.f32.mxu0 %vm2604_vm2, %v6979_v34 }
 0x17e   : > { %5958 = vmatpush3.msra.mxu0 %v6840_v25  ;;  %5983 = vmatprep.subr.mxu1 %v5179_v23  ;;  %v7116_v25 = vld [vmem:[#allocation2 + $0x32] sm:$0xff] }
 0x17f   : > { %6009 = vmatprep.subr.mxu0 %v5196_v27  ;;  %5885 = vmatmul.mubr.msk.f32.gmra.mxu1 %vm2604_vm2, %v3036_v26 }
 0x180   : > { %5911 = vmatmul.mubr.msk.f32.gmra.mxu0 %vm2604_vm2, %v6981_v56  ;;  %5887 = vmatprep.mubr.msk.f32.mxu1 %vm2604_vm2, %v7104_v21 }
 0x181   : > { %5913 = vmatprep.mubr.msk.f32.mxu0 %vm2604_vm2, %v7000_v33 }
 0x183   : > { %5888 = vmatmul.mubr.msk.f32.gmra.mxu1 %vm2604_vm2, %v7110_v2 }
 0x184   : > { %5914 = vmatmul.mubr.msk.f32.gmra.mxu0 %vm2604_vm2, %v7002_v43  ;;  %5890 = vmatprep.mubr.msk.f32.mxu1 %vm2604_vm2, %v7116_v25 }
 0x185   : > { %5916 = vmatprep.mubr.msk.f32.mxu0 %vm2604_vm2, %v7019_v53 }
 0x187   : > { %5891 = vmatmul.mubr.msk.f32.gmra.mxu1 %vm2604_vm2, %v7122_v17 }
 0x188   : > { %5917 = vmatmul.mubr.msk.f32.gmra.mxu0 %vm2604_vm2, %v7021_v11  ;;  %5893 = vmatprep.mubr.msk.f32.mxu1 %vm2604_vm2, %v7128_v28 }
 0x189   : > { %5919 = vmatprep.mubr.msk.f32.mxu0 %vm2604_vm2, %v7037_v3 }
 0x18b   : > { %5894 = vmatmul.mubr.msk.f32.gmra.mxu1 %vm2604_vm2, %v7134_v36 }
 0x18c   : > { %5920 = vmatmul.mubr.msk.f32.gmra.mxu0 %vm2604_vm2, %v7039_v40  ;;  %5896 = vmatprep.mubr.msk.f32.mxu1 %vm2604_vm2, %v7140_v1 }
 0x18d   : > { %5922 = vmatprep.mubr.msk.f32.mxu0 %vm2604_vm2, %v7055_v54 }
 0x18f   : > { %5897 = vmatmul.mubr.msk.f32.gmra.mxu1 %vm2604_vm2, %v7146_v8 }
 0x190   : > { %5923 = vmatmul.mubr.msk.f32.gmra.mxu0 %vm2604_vm2, %v7057_v16  ;;  %5899 = vmatprep.mubr.msk.f32.mxu1 %vm2604_vm2, %v7152_v6 }
 0x191   : > { %5925 = vmatprep.mubr.msk.f32.mxu0 %vm2604_vm2, %v7072_v45 }
 0x193   : > { %5900 = vmatmul.mubr.msk.f32.gmra.mxu1 %vm2604_vm2, %v7158_v49 }
 0x194   : > { %5926 = vmatmul.mubr.msk.f32.gmra.mxu0 %vm2604_vm2, %v7074_v59  ;;  %5902 = vmatprep.mubr.msk.f32.mxu1 %vm2604_vm2, %v7164_v22 }
 0x195   : > { %5928 = vmatprep.mubr.msk.f32.mxu0 %vm2604_vm2, %v7166_v10 }
 0x197   : > { %5903 = vmatmul.mubr.msk.f32.gmra.mxu1 %vm2604_vm2, %v7172_v4 }
 0x198   : > { %5929 = vmatmul.mubr.msk.f32.gmra.mxu0 %vm2604_vm2, %v7174_v14  ;;  %5933 = vmatprep.mubr.msk.f32.mxu1 %vm2604_vm2, %v6956_v24  ;;  %v7241_v24 = vld [vmem:[#allocation2 + $0x82] sm:$0xff] }
 0x199   : > { %5959 = vmatprep.mubr.msk.f32.mxu0 %vm2604_vm2, %v3035_v9 }
 0x19b   : > { %5934 = vmatmul.mubr.msk.f32.vlgmr.msra.gmra.mxu1 %vm2604_vm2, %v6953_v58  ;;  %v3469_v58 = vld [vmem:[#allocation2 + $0x81] sm:$0xff] }
 0x19c   : > { %5960 = vmatmul.mubr.msk.f32.vlgmr.msra.gmra.mxu0 %vm2604_vm2, %v3036_v26  ;;  %5984 = vmatpush3.msra.mxu1 %v5179_v23 }
 0x19d   : > { %5936 = vmatprep.mubr.msk.f32.mxu1 %vm2604_vm2, %v6977_v31  ;;  %5962 = vmatprep.mubr.msk.f32.mxu0 %vm2604_vm2, %v7104_v21 }
 0x19e   : > { %6010 = vmatpush3.msra.mxu0 %v5196_v27  ;;  %6035 = vmatprep.subr.mxu1 %v5213_v32 }
 0x19f   : > { %6061 = vmatprep.subr.msk.mxu0 %vm335_vm0, %v4526_v48  ;;  %5937 = vmatmul.mubr.msk.f32.gmra.mxu1 %vm2604_vm2, %v6975_v30 }
 0x1a0   : > { %5963 = vmatmul.mubr.msk.f32.gmra.mxu0 %vm2604_vm2, %v7110_v2  ;;  %5939 = vmatprep.mubr.msk.f32.mxu1 %vm2604_vm2, %v6998_v42 }
 0x1a1   : > { %5965 = vmatprep.mubr.msk.f32.mxu0 %vm2604_vm2, %v7116_v25 }
 0x1a3   : > { %5940 = vmatmul.mubr.msk.f32.gmra.mxu1 %vm2604_vm2, %v6996_v46 }
 0x1a4   : > { %5966 = vmatmul.mubr.msk.f32.gmra.mxu0 %vm2604_vm2, %v7122_v17  ;;  %5942 = vmatprep.mubr.msk.f32.mxu1 %vm2604_vm2, %v7017_v44 }
 0x1a5   : > { %5968 = vmatprep.mubr.msk.f32.mxu0 %vm2604_vm2, %v7128_v28 }
 0x1a7   : > { %5943 = vmatmul.mubr.msk.f32.gmra.mxu1 %vm2604_vm2, %v7015_v7 }
 0x1a8   : > { %5969 = vmatmul.mubr.msk.f32.gmra.mxu0 %vm2604_vm2, %v7134_v36  ;;  %5945 = vmatprep.mubr.msk.f32.mxu1 %vm2604_vm2, %v7035_v62 }
 0x1a9   : > { %5971 = vmatprep.mubr.msk.f32.mxu0 %vm2604_vm2, %v7140_v1 }
 0x1ab   : > { %5946 = vmatmul.mubr.msk.f32.gmra.mxu1 %vm2604_vm2, %v7033_v52 }
 0x1ac   : > { %5972 = vmatmul.mubr.msk.f32.gmra.mxu0 %vm2604_vm2, %v7146_v8  ;;  %5948 = vmatprep.mubr.msk.f32.mxu1 %vm2604_vm2, %v7053_v13 }
 0x1ad   : > { %5974 = vmatprep.mubr.msk.f32.mxu0 %vm2604_vm2, %v7152_v6 }
 0x1af   : > { %5949 = vmatmul.mubr.msk.f32.gmra.mxu1 %vm2604_vm2, %v7051_v20 }
 0x1b0   : > { %5975 = vmatmul.mubr.msk.f32.gmra.mxu0 %vm2604_vm2, %v7158_v49  ;;  %5951 = vmatprep.mubr.msk.f32.mxu1 %vm2604_vm2, %v7070_v0 }
 0x1b1   : > { %5977 = vmatprep.mubr.msk.f32.mxu0 %vm2604_vm2, %v7164_v22 }
 0x1b3   : > { %5952 = vmatmul.mubr.msk.f32.gmra.mxu1 %vm2604_vm2, %v7068_v5 }
 0x1b4   : > { %5978 = vmatmul.mubr.msk.f32.gmra.mxu0 %vm2604_vm2, %v7172_v4  ;;  %5954 = vmatprep.mubr.msk.f32.mxu1 %vm2604_vm2, %v3469_v58 }
 0x1b5   : > { %5980 = vmatprep.mubr.msk.f32.mxu0 %vm2604_vm2, %v7241_v24 }
 0x1b7   : > { %5955 = vmatmul.mubr.msk.f32.gmra.mxu1 %vm2604_vm2, %v3470_v39 }
 0x1b8   : > { %5981 = vmatmul.mubr.msk.f32.gmra.mxu0 %vm2604_vm2, %v7246_v50  ;;  %5985 = vmatprep.mubr.msk.f32.mxu1 %vm2604_vm2, %v6979_v34  ;;  %v3892_v34 = vld [vmem:[#allocation2 + $0x98] sm:$0xff] }
 0x1b9   : > { %6011 = vmatprep.mubr.msk.f32.mxu0 %vm2604_vm2, %v6977_v31  ;;  %v4102_v31 = vld [vmem:[#allocation2 + $0x91] sm:$0xff] }
 0x1bb   : > { %5986 = vmatmul.mubr.msk.f32.vlgmr.msra.gmra.mxu1 %vm2604_vm2, %v6981_v56  ;;  %v4103_v56 = vld [vmem:[#allocation2 + $0x99] sm:$0xff] }
 0x1bc   : > { %6012 = vmatmul.mubr.msk.f32.vlgmr.msra.gmra.mxu0 %vm2604_vm2, %v6975_v30  ;;  %6036 = vmatpush3.msra.mxu1 %v5213_v32  ;;  %v3891_v30 = vld [vmem:[#allocation2 + $0x90] sm:$0xff] }
 0x1bd   : > { %5988 = vmatprep.mubr.msk.f32.mxu1 %vm2604_vm2, %v7000_v33  ;;  %6014 = vmatprep.mubr.msk.f32.mxu0 %vm2604_vm2, %v6998_v42  ;;  %v5231_v42 = vld [vmem:[%s6301_s19 + $0x1e8] sm:$0xff]  ;;  %v5232_v33 = vld [vmem:[%s6301_s19 + $0x1f0] sm:$0xff] }
 0x1be   : > { %6062 = vmatpush3.msk.msra.mxu0 %vm335_vm0, %v4526_v48 }
 0x1bf   : > { %5989 = vmatmul.mubr.msk.f32.gmra.mxu1 %vm2604_vm2, %v7002_v43  ;;  %v5233_v43 = vld [vmem:[%s6301_s19 + $0x1f8] sm:$0xff] }
 0x1c0   : > { %6015 = vmatmul.mubr.msk.f32.gmra.mxu0 %vm2604_vm2, %v6996_v46  ;;  %5991 = vmatprep.mubr.msk.f32.mxu1 %vm2604_vm2, %v7019_v53  ;;  %v5230_v46 = vld [vmem:[%s6301_s19 + $0x1e0] sm:$0xff]  ;;  %v5241_v53 = vld [vmem:[%s6301_s19 + $0x238] sm:$0xff] }
 0x1c1   : > { %6017 = vmatprep.mubr.msk.f32.mxu0 %vm2604_vm2, %v7017_v44  ;;  %v5240_v44 = vld [vmem:[%s6301_s19 + $0x230] sm:$0xff] }
 0x1c3   : > { %5992 = vmatmul.mubr.msk.f32.gmra.mxu1 %vm2604_vm2, %v7021_v11  ;;  %v5243_v11 = vld [vmem:[%s6301_s19 + $0x248] sm:$0xff] }
 0x1c4   : > { %6018 = vmatmul.mubr.msk.f32.gmra.mxu0 %vm2604_vm2, %v7015_v7  ;;  %5994 = vmatprep.mubr.msk.f32.mxu1 %vm2604_vm2, %v7037_v3  ;;  %v5238_v7 = vld [vmem:[%s6301_s19 + $0x220] sm:$0xff]  ;;  %s242_s19 = sand.u32 1, %s6184_s22  }
 0x1c5   : > { %6020 = vmatprep.mubr.msk.f32.mxu0 %vm2604_vm2, %v7035_v62  ;;  %v2962_v62 = vpop.f32.mrf.mxu0  ;;  %s4834_s13 = sshll.u32 %s242_s19, 6  ;;  %s7495_s25 = scalar_lea.sflag [#allocation4], %s242_s19 }
 0x1c6   : > { %s7445_s14 = scalar_lea.vmem [#allocation3], %s4834_s13 }
 0x1c7   : > { %5995 = vmatmul.mubr.msk.f32.gmra.mxu1 %vm2604_vm2, %v7039_v40  ;;  %s4768_s16 = sshll.u32 %s7445_s14, 4  ;;  %s7489_s16 = int_to_ptr.vmem [resolvable:$true] %s4768_s16 }
 0x1c8   : > { %6021 = vmatmul.mubr.msk.f32.gmra.mxu0 %vm2604_vm2, %v7033_v52  ;;  %5997 = vmatprep.mubr.msk.f32.mxu1 %vm2604_vm2, %v7055_v54  ;;  %v2777_v52 = vpop.f32.mrf.mxu1  ;;  %s6132_s26 = scalar_lea.vmem %s7489_s16, 1024  ;;  %p6139_p0 = scmp.lt.s32.totalorder %s7489_s16, %s6137_s29 }
 0x1c9   : > { %6023 = vmatprep.mubr.msk.f32.mxu0 %vm2604_vm2, %v7053_v13  ;;  %p6133_p11 = scmp.ne.s32.totalorder %s7489_s16, %s6132_s26  ;;  %p6140_p1 = scmp.lt.s32.totalorder %s6138_s9, %s6132_s26 }
 0x1cb   : > { %5998 = vmatmul.mubr.msk.f32.gmra.mxu1 %vm2604_vm2, %v7057_v16  ;;  %p6134_p12 = pnand %p6133_p11, %p6271_p5  ;;  %p6141_p2 = por %p6140_p1, %p6139_p0 }
 0x1cc   : > { %6024 = vmatmul.mubr.msk.f32.gmra.mxu0 %vm2604_vm2, %v7051_v20  ;;  %6000 = vmatprep.mubr.msk.f32.mxu1 %vm2604_vm2, %v7072_v45 }
 0x1cd   : > { %6026 = vmatprep.mubr.msk.f32.mxu0 %vm2604_vm2, %v7070_v0  ;;  %p6135_p13 = pneg %p6134_p12 }
 0x1cf   : > { %6001 = vmatmul.mubr.msk.f32.gmra.mxu1 %vm2604_vm2, %v7074_v59  ;;  %p6142_p3 = pnand %p6141_p2, %p6135_p13 }
 0x1d0   : > { %6027 = vmatmul.mubr.msk.f32.gmra.mxu0 %vm2604_vm2, %v7068_v5  ;;  %6003 = vmatprep.mubr.msk.f32.mxu1 %vm2604_vm2, %v7166_v10 }
 0x1d1   : > { %6029 = vmatprep.mubr.msk.f32.mxu0 %vm2604_vm2, %v3469_v58 }
 0x1d3   : > { %6004 = vmatmul.mubr.msk.f32.gmra.mxu1 %vm2604_vm2, %v7174_v14 }
 0x1d4   : > { %6030 = vmatmul.mubr.msk.f32.gmra.mxu0 %vm2604_vm2, %v3470_v39  ;;  %6006 = vmatprep.mubr.msk.f32.mxu1 %vm2604_vm2, %v3891_v30 }
 0x1d5   : > { %6032 = vmatprep.mubr.msk.f32.mxu0 %vm2604_vm2, %v4102_v31 }
 0x1d7   : > { %6007 = vmatmul.mubr.msk.f32.gmra.mxu1 %vm2604_vm2, %v3892_v34 }
 0x1d8   : > { %6033 = vmatmul.mubr.msk.f32.gmra.mxu0 %vm2604_vm2, %v4103_v56  ;;  %6037 = vmatprep.mubr.msk.f32.mxu1 %vm2604_vm2, %v7104_v21 }
 0x1d9   : > { %6063 = vmatprep.mubr.msk.f32.mxu0 %vm286_vm1, %v5230_v46 }
 0x1db   : > { %6038 = vmatmul.mubr.msk.f32.vlgmr.msra.gmra.mxu1 %vm2604_vm2, %v7110_v2 }
 0x1dc   : > { %6064 = vmatmul.mubr.msk.f32.vlgmr.msra.gmra.mxu0 %vm286_vm1, %v5231_v42  ;;  %6040 = vmatprep.mubr.msk.f32.mxu1 %vm2604_vm2, %v7116_v25 }
 0x1dd   : > { %6066 = vmatprep.mubr.msk.f32.mxu0 %vm286_vm1, %v5232_v33 }
 0x1df   : > { %6041 = vmatmul.mubr.msk.f32.gmra.mxu1 %vm2604_vm2, %v7122_v17 }
 0x1e0   : > { %6067 = vmatmul.mubr.msk.f32.gmra.mxu0 %vm286_vm1, %v5233_v43  ;;  %6043 = vmatprep.mubr.msk.f32.mxu1 %vm2604_vm2, %v7128_v28 }
 0x1e1   : > { %6069 = vmatprep.mubr.msk.f32.mxu0 %vm286_vm1, %v5234_v61 }
 0x1e3   : > { %6044 = vmatmul.mubr.msk.f32.gmra.mxu1 %vm2604_vm2, %v7134_v36 }
 0x1e4   : > { %6070 = vmatmul.mubr.msk.f32.gmra.mxu0 %vm286_vm1, %v5235_v15  ;;  %6046 = vmatprep.mubr.msk.f32.mxu1 %vm2604_vm2, %v7140_v1 }
 0x1e5   : > { %6072 = vmatprep.mubr.msk.f32.mxu0 %vm286_vm1, %v5236_v38 }
 0x1e7   : > { %6047 = vmatmul.mubr.msk.f32.gmra.mxu1 %vm2604_vm2, %v7146_v8 }
 0x1e8   : > { %6073 = vmatmul.mubr.msk.f32.gmra.mxu0 %vm286_vm1, %v5237_v18  ;;  %6049 = vmatprep.mubr.msk.f32.mxu1 %vm2604_vm2, %v7152_v6 }
 0x1e9   : > { %6075 = vmatprep.mubr.msk.f32.mxu0 %vm286_vm1, %v5238_v7 }
 0x1eb   : > { %6050 = vmatmul.mubr.msk.f32.gmra.mxu1 %vm2604_vm2, %v7158_v49 }
 0x1ec   : > { %6076 = vmatmul.mubr.msk.f32.gmra.mxu0 %vm286_vm1, %v5239_v12  ;;  %6052 = vmatprep.mubr.msk.f32.mxu1 %vm2604_vm2, %v7164_v22 }
 0x1ed   : > { %6078 = vmatprep.mubr.msk.f32.mxu0 %vm286_vm1, %v5240_v44 }
 0x1ef   : > { %6053 = vmatmul.mubr.msk.f32.gmra.mxu1 %vm2604_vm2, %v7172_v4 }
 0x1f0   : > { %6079 = vmatmul.mubr.msk.f32.gmra.mxu0 %vm286_vm1, %v5241_v53  ;;  %6055 = vmatprep.mubr.msk.f32.mxu1 %vm2604_vm2, %v7241_v24  ;;  %v2963_v24 = vadd.f32 %v2962_v62, %v2777_v52 }
 0x1f1   : > { %6081 = vmatprep.mubr.msk.f32.mxu0 %vm286_vm1, %v5242_v63 }
 0x1f3   : > { %6056 = vmatmul.mubr.msk.f32.gmra.mxu1 %vm2604_vm2, %v7246_v50 }
 0x1f4   : > { %6082 = vmatmul.mubr.msk.f32.gmra.mxu0 %vm286_vm1, %v5243_v11  ;;  %6058 = vmatprep.mubr.msk.f32.mxu1 %vm2604_vm2, %v4313_v19 }
 0x1f5   : > { %6084 = vmatprep.mubr.msk.f32.mxu0 %vm286_vm1, %v5244_v41 }
 0x1f7   : > { %6059 = vmatmul.mubr.msk.f32.gmra.mxu1 %vm2604_vm2, %v4314_v57 }
 0x1f8   : > { %6085 = vmatmul.mubr.msk.f32.gmra.mxu0 %vm286_vm1, %v5245_v51 }
 0x21f   : > { %v5834_v3 = vpop.f32.mrf.mxu1 }
 0x220   : > { %v5860_v40 = vpop.f32.mrf.mxu0 }
 0x221   : > { %v2786_v55 = vpop.f32.mrf.mxu1 }
 0x222   : > { %v2971_v35 = vpop.f32.mrf.mxu0 }
 0x223   : > { %v2972_v20 = vadd.f32 %v2971_v35, %v2786_v55  ;;  %v5837_v13 = vpop.f32.mrf.mxu1 }
 0x224   : > { %v5863_v54 = vpop.f32.mrf.mxu0 }
 0x225   : > { %v2795_v16 = vpop.f32.mrf.mxu1 }
 0x226   : > { %v2980_v5 = vpop.f32.mrf.mxu0 }
 0x227   : > { %v2981_v47 = vadd.f32 %v2980_v5, %v2795_v16  ;;  %v5840_v0 = vpop.f32.mrf.mxu1 }
 0x228   : > { %v5866_v45 = vpop.f32.mrf.mxu0 }
 0x229   : > { %v2804_v59 = vpop.f32.mrf.mxu1 }
 0x22a   : > { %v2989_v37 = vpop.f32.mrf.mxu0 }
 0x22b   : > { %v2990_v9 = vadd.f32 %v2989_v37, %v2804_v59  ;;  %v5843_v23 = vpop.f32.mrf.mxu1 }
 0x22c   : > { %v5869_v27 = vpop.f32.mrf.mxu0 }
 0x22d   : > { %v2813_v26 = vpop.f32.mrf.mxu1 }
 0x22e   : > { %v2998_v21 = vpop.f32.mrf.mxu0 }
 0x22f   : > { %v2999_v2 = vadd.f32 %v2998_v21, %v2813_v26  ;;  %v5846_v25 = vpop.f32.mrf.mxu1 }
 0x230   : > { %v5872_v17 = vpop.f32.mrf.mxu0 }
 0x231   : > { %v2822_v28 = vpop.f32.mrf.mxu1 }
 0x232   : > { %v3007_v36 = vpop.f32.mrf.mxu0 }
 0x233   : > { %v3008_v1 = vadd.f32 %v3007_v36, %v2822_v28  ;;  %v5849_v8 = vpop.f32.mrf.mxu1 }
 0x234   : > { %v5875_v6 = vpop.f32.mrf.mxu0 }
 0x235   : > { %v2831_v49 = vpop.f32.mrf.mxu1 }
 0x236   : > { %v3016_v22 = vpop.f32.mrf.mxu0 }
 0x237   : > { %v3017_v10 = vadd.f32 %v3016_v22, %v2831_v49  ;;  %v5852_v4 = vpop.f32.mrf.mxu1 }
 0x238   : > { %v5878_v14 = vpop.f32.mrf.mxu0 }
 0x239   : > { %v2840_v29 = vpop.f32.mrf.mxu1 }
 0x23a   : > { %v3025_v60 = vpop.f32.mrf.mxu0 }
 0x23b   : > { %v3026_v32 = vadd.f32 %v3025_v60, %v2840_v29  ;;  %v5883_v48 = vpop.f32.mrf.mxu1 }
 0x23c   : > { %v5909_v58 = vpop.f32.mrf.mxu0 }
 0x23d   : > { %v3165_v39 = vpop.f32.mrf.mxu1 }
 0x23e   : > { %v3376_v50 = vpop.f32.mrf.mxu0  ;;  %v3236_v30 = vadd.f32 %v3165_v39, %v2963_v24 }
 0x23f   : > { %v5886_v31 = vpop.f32.mrf.mxu1 }
 0x240   : > { %v5912_v34 = vpop.f32.mrf.mxu0  ;;  %v7372_v56 = vadd.f32 %v3376_v50, %v3236_v30 }
 0x241   : > { %v3174_v46 = vpop.f32.mrf.mxu1 }
 0x242   : > { %v3385_v42 = vpop.f32.mrf.mxu0  ;;  %v3237_v33 = vadd.f32 %v3174_v46, %v2972_v20 }
 0x243   : > { %v5889_v43 = vpop.f32.mrf.mxu1 }
 0x244   : > { %v5915_v61 = vpop.f32.mrf.mxu0  ;;  %v7374_v15 = vadd.f32 %v3385_v42, %v3237_v33 }
 0x245   : > { %v3183_v38 = vpop.f32.mrf.mxu1 }
 0x246   : > { %v3394_v18 = vpop.f32.mrf.mxu0  ;;  %v3238_v7 = vadd.f32 %v3183_v38, %v2981_v47 }
 0x247   : > { %v5892_v12 = vpop.f32.mrf.mxu1 }
 0x248   : > { %v5918_v44 = vpop.f32.mrf.mxu0  ;;  %v7376_v53 = vadd.f32 %v3394_v18, %v3238_v7 }
 0x249   : > { %v3192_v63 = vpop.f32.mrf.mxu1 }
 0x24a   : > { %v3403_v11 = vpop.f32.mrf.mxu0  ;;  %v3239_v19 = vadd.f32 %v3192_v63, %v2990_v9 }
 0x24b   : > { %v5895_v41 = vpop.f32.mrf.mxu1 }
 0x24c   : > { %v5921_v57 = vpop.f32.mrf.mxu0  ;;  %v7378_v51 = vadd.f32 %v3403_v11, %v3239_v19 }
 0x24d   : > { %v3201_v52 = vpop.f32.mrf.mxu1 }
 0x24e   : > { %v3412_v62 = vpop.f32.mrf.mxu0  ;;  %v3240_v3 = vadd.f32 %v3201_v52, %v2999_v2 }
 0x24f   : > { %v5898_v40 = vpop.f32.mrf.mxu1 }
 0x250   : > { %v5924_v55 = vpop.f32.mrf.mxu0  ;;  %v7380_v35 = vadd.f32 %v3412_v62, %v3240_v3 }
 0x251   : > { %v3210_v20 = vpop.f32.mrf.mxu1 }
 0x252   : > { %v3421_v13 = vpop.f32.mrf.mxu0  ;;  %v3241_v54 = vadd.f32 %v3210_v20, %v3008_v1 }
 0x253   : > { %v5901_v16 = vpop.f32.mrf.mxu1 }
 0x254   : > { %v5927_v5 = vpop.f32.mrf.mxu0  ;;  %v7382_v47 = vadd.f32 %v3421_v13, %v3241_v54 }
 0x255   : > { %v3219_v0 = vpop.f32.mrf.mxu1 }
 0x256   : > { %v3430_v45 = vpop.f32.mrf.mxu0  ;;  %v3242_v59 = vadd.f32 %v3219_v0, %v3017_v10 }
 0x257   : > { %v5904_v37 = vpop.f32.mrf.mxu1 }
 0x258   : > { %v5930_v9 = vpop.f32.mrf.mxu0  ;;  %v7384_v23 = vadd.f32 %v3430_v45, %v3242_v59 }
 0x259   : > { %v3228_v27 = vpop.f32.mrf.mxu1 }
 0x25a   : > { %v3439_v26 = vpop.f32.mrf.mxu0  ;;  %v3243_v21 = vadd.f32 %v3228_v27, %v3026_v32 }
 0x25b   : > { %v5935_v2 = vpop.f32.mrf.mxu1 }
 0x25c   : > { %v5961_v25 = vpop.f32.mrf.mxu0  ;;  %v7386_v17 = vadd.f32 %v3439_v26, %v3243_v21 }
 0x25d   : > { %v3587_v28 = vpop.f32.mrf.mxu1 }
 0x25e   : > { %v3798_v36 = vpop.f32.mrf.mxu0  ;;  %v3658_v2 = vadd.f32 %v3587_v28, %v7372_v56 }
 0x25f   : > { %v5938_v1 = vpop.f32.mrf.mxu1 }
 0x260   : > { %v5964_v8 = vpop.f32.mrf.mxu0 }
 0x261   : > { %v3596_v6 = vpop.f32.mrf.mxu1 }
 0x262   : > { %v3807_v49 = vpop.f32.mrf.mxu0 }
 0x263   : > { %v5941_v22 = vpop.f32.mrf.mxu1 }
 0x264   : > { %v5967_v4 = vpop.f32.mrf.mxu0 }
 0x265   : > { %v3605_v10 = vpop.f32.mrf.mxu1  ;;  %v3869_v4 = vadd.f32 %v3798_v36, %v3658_v2 }
 0x266   : > { %v7388_v14 = vpop.f32.mrf.mxu0  ;;  %v3660_v56 = vadd.f32 %v3605_v10, %v7376_v53 }
 0x267   : > { %v5944_v29 = vpop.f32.mrf.mxu1 }
 0x268   : > { %v5970_v60 = vpop.f32.mrf.mxu0  ;;  %v3659_v29 = vadd.f32 %v3596_v6, %v7374_v15  ;;  %v3871_v15 = vadd.f32 %v7388_v14, %v3660_v56 }
 0x269   : > { %v7390_v48 = vpop.f32.mrf.mxu1 }
 0x26a   : > { %v7392_v32 = vpop.f32.mrf.mxu0  ;;  %v3661_v6 = vadd.f32 %v7390_v48, %v7378_v51 }
 0x26b   : > { %v5947_v58 = vpop.f32.mrf.mxu1 }
 0x26c   : > { %v5973_v24 = vpop.f32.mrf.mxu0  ;;  %v3872_v14 = vadd.f32 %v7392_v32, %v3661_v6 }
 0x26d   : > { %v7394_v39 = vpop.f32.mrf.mxu1 }
 0x26e   : > { %v7396_v50 = vpop.f32.mrf.mxu0  ;;  %v3662_v51 = vadd.f32 %v7394_v39, %v7380_v35 }
 0x26f   : > { %v5950_v30 = vpop.f32.mrf.mxu1 }
 0x270   : > { %v5976_v31 = vpop.f32.mrf.mxu0 }
 0x271   : > { %v7398_v34 = vpop.f32.mrf.mxu1 }
 0x272   : > { %v7400_v46 = vpop.f32.mrf.mxu0  ;;  %v3663_v2 = vadd.f32 %v7398_v34, %v7382_v47 }
 0x273   : > { %v5953_v42 = vpop.f32.mrf.mxu1 }
 0x274   : > { %v5979_v33 = vpop.f32.mrf.mxu0  ;;  %v3870_v42 = vadd.f32 %v3807_v49, %v3659_v29  ;;  %v7434_v49 = vld [vmem:[%s7540_s5] ss:$0 sm:$0xff]  ;;  %v3874_v47 = vadd.f32 %v7400_v46, %v3663_v2 }
 0x275   : > { %v7402_v43 = vpop.f32.mrf.mxu1 }
 0x276   : > { %v7404_v61 = vpop.f32.mrf.mxu0  ;;  %v3664_v34 = vadd.f32 %v7402_v43, %v7384_v23 }
 0x277   : > { %v5956_v38 = vpop.f32.mrf.mxu1 }
 0x278   : > { %v5982_v18 = vpop.f32.mrf.mxu0  ;;  %v3875_v46 = vadd.f32 %v7404_v61, %v3664_v34 }
 0x279   : > { %v7406_v7 = vpop.f32.mrf.mxu1 }
 0x27a   : > { %v7408_v12 = vpop.f32.mrf.mxu0  ;;  %v3665_v23 = vadd.f32 %v7406_v7, %v7386_v17 }
 0x27b   : > { %v5987_v44 = vpop.f32.mrf.mxu1 }
 0x27c   : > { %v6013_v63 = vpop.f32.mrf.mxu0  ;;  %v3876_v61 = vadd.f32 %v7408_v12, %v3665_v23 }
 0x27d   : > { %v4009_v11 = vpop.f32.mrf.mxu1 }
 0x27e   : > { %v4220_v19 = vpop.f32.mrf.mxu0  ;;  %v4080_v24 = vadd.f32 %v4009_v11, %v3869_v4 }
 0x27f   : > { %v5990_v41 = vpop.f32.mrf.mxu1 }
 0x280   : > { %v6016_v57 = vpop.f32.mrf.mxu0  ;;  %v4291_v38 = vadd.f32 %v4220_v19, %v4080_v24 }
 0x281   : > { %v4018_v52 = vpop.f32.mrf.mxu1 }
 0x282   : > { %v4229_v62 = vpop.f32.mrf.mxu0  ;;  %v4081_v18 = vadd.f32 %v4018_v52, %v3870_v42 }
 0x283   : > { %v5993_v3 = vpop.f32.mrf.mxu1 }
 0x284   : > { %v6019_v40 = vpop.f32.mrf.mxu0  ;;  %v4292_v11 = vadd.f32 %v4229_v62, %v4081_v18 }
 0x285   : > { %v4027_v55 = vpop.f32.mrf.mxu1 }
 0x286   : > { %v4238_v20 = vpop.f32.mrf.mxu0  ;;  %v4082_v41 = vadd.f32 %v4027_v55, %v3871_v15 }
 0x287   : > { %v5996_v13 = vpop.f32.mrf.mxu1 }
 0x288   : > { %v6022_v54 = vpop.f32.mrf.mxu0 }
 0x289   : > { %v4036_v16 = vpop.f32.mrf.mxu1  ;;  %v4293_v54 = vadd.f32 %v4238_v20, %v4082_v41 }
 0x28a   : > { %v4247_v5 = vpop.f32.mrf.mxu0 }
 0x28b   : > { %v5999_v0 = vpop.f32.mrf.mxu1 }
 0x28c   : > { %v6025_v45 = vpop.f32.mrf.mxu0  ;;  %v4083_v0 = vadd.f32 %v4036_v16, %v3872_v14 }
 0x28d   : > { %v4045_v59 = vpop.f32.mrf.mxu1 }
 0x28e   : > { %v7410_v37 = vpop.f32.mrf.mxu0  ;;  %v4294_v16 = vadd.f32 %v4247_v5, %v4083_v0 }
 0x28f   : > { %v6002_v9 = vpop.f32.mrf.mxu1 }
 0x290   : > { %v6028_v27 = vpop.f32.mrf.mxu0 }
 0x291   : > { %v7412_v26 = vpop.f32.mrf.mxu1  ;;  %v3873_v27 = vadd.f32 %v7396_v50, %v3662_v51 }
 0x292   : > { %v7414_v21 = vpop.f32.mrf.mxu0 }
 0x293   : > { %v6005_v25 = vpop.f32.mrf.mxu1 }
 0x294   : > { %v6031_v1 = vpop.f32.mrf.mxu0  ;;  %v4084_v25 = vadd.f32 %v4045_v59, %v3873_v27  ;;  %v4085_v59 = vadd.f32 %v7412_v26, %v3874_v47 }
 0x295   : > { %v7417_v8 = vpop.f32.mrf.mxu1 }
 0x296   : > { %v7419_v22 = vpop.f32.mrf.mxu0  ;;  %v4295_v5 = vadd.f32 %v7410_v37, %v4084_v25  ;;  %v4296_v37 = vadd.f32 %v7414_v21, %v4085_v59  ;;  %v4086_v26 = vadd.f32 %v7417_v8, %v3875_v46 }
 0x297   : > { %v6008_v60 = vpop.f32.mrf.mxu1 }
 0x298   : > { %v6034_v58 = vpop.f32.mrf.mxu0  ;;  %v4297_v41 = vadd.f32 %v7419_v22, %v4086_v26 }
 0x299   : > { %v7422_v30 = vpop.f32.mrf.mxu1 }
 0x29a   : > { %v7424_v31 = vpop.f32.mrf.mxu0  ;;  %v4087_v21 = vadd.f32 %v7422_v30, %v3876_v61 }
 0x29b   : > { %v6039_v28 = vpop.f32.mrf.mxu1 }
 0x29c   : > { %v6065_v33 = vpop.f32.mrf.mxu0 }
 0x29d   : > { %v4431_v44 = vpop.f32.mrf.mxu1 }
 0x29e   : > { %v4644_v36 = vpop.f32.mrf.mxu0  ;;  %v4502_v63 = vadd.f32 %v4431_v44, %v4291_v38 }
 0x29f   : > { %v6042_v53 = vpop.f32.mrf.mxu1 }
 0x2a0   : > { %v6068_v10 = vpop.f32.mrf.mxu0  ;;  %v4715_v19 = vadd.f32 %v4644_v36, %v4502_v63 }
 0x2a1   : > { %v4440_v57 = vpop.f32.mrf.mxu1 }
 0x2a2   : > { %v4653_v52 = vpop.f32.mrf.mxu0  ;;  %v4730_v48 = vadd.f32 %v7434_v49, %v4715_v19  ;;  %v4503_v3 = vadd.f32 %v4440_v57, %v4292_v11 }
 0x2a3   : > { %v6045_v40 = vpop.f32.mrf.mxu1 }
 0x2a4   : > { %v6071_v13 = vpop.f32.mrf.mxu0  ;;  %v4738_v45 = vmax.f32 %v4730_v48, 0.0  ;;  %v4716_v62 = vadd.f32 %v4653_v52, %v4503_v3  ;;  %v4298_v3 = vadd.f32 %v7424_v31, %v4087_v21 }
 0x2a5   : > { %v4449_v55 = vpop.f32.mrf.mxu1 }
 0x2a6   : > { %v4662_v9 = vpop.f32.mrf.mxu0  ;;  %4746 = vst.msk [vmem:[%s7445_s14] sm:$0xff] %vm2604_vm2, %v4738_v45  ;;  %v4731_v35 = vadd.f32 %v7434_v49, %v4716_v62  ;;  %v4504_v32 = vadd.f32 %v4449_v55, %v4293_v54 }
 0x2a7   : > { %v6048_v39 = vpop.f32.mrf.mxu1 }
 0x2a8   : > { %v6074_v20 = vpop.f32.mrf.mxu0  ;;  %v4739_v1 = vmax.f32 %v4731_v35, 0.0  ;;  %v4717_v4 = vadd.f32 %v4662_v9, %v4504_v32 }
 0x2a9   : > { %v4458_v29 = vpop.f32.mrf.mxu1 }
 0x2aa   : > { %v4671_v50 = vpop.f32.mrf.mxu0  ;;  %4747 = vst.msk [vmem:[%s7445_s14 + $0x8] sm:$0xff] %vm2604_vm2, %v4739_v1  ;;  %v4732_v60 = vadd.f32 %v7434_v49, %v4717_v4  ;;  %v4505_v58 = vadd.f32 %v4458_v29, %v4294_v16 }
 0x2ab   : > { %v6051_v24 = vpop.f32.mrf.mxu1 }
 0x2ac   : > { %v6077_v42 = vpop.f32.mrf.mxu0  ;;  %v4740_v56 = vmax.f32 %v4732_v60, 0.0  ;;  %v4718_v28 = vadd.f32 %v4671_v50, %v4505_v58 }
 0x2ad   : > { %v4467_v33 = vpop.f32.mrf.mxu1 }
 0x2ae   : > { %v4680_v38 = vpop.f32.mrf.mxu0  ;;  %4748 = vst.msk [vmem:[%s7445_s14 + $0x10] sm:$0xff] %vm2604_vm2, %v4740_v56  ;;  %v4733_v43 = vadd.f32 %v7434_v49, %v4718_v28  ;;  %v4506_v18 = vadd.f32 %v4467_v33, %v4295_v5 }
 0x2af   : > { %v6054_v44 = vpop.f32.mrf.mxu1 }
 0x2b0   : > { %v6080_v36 = vpop.f32.mrf.mxu0  ;;  %v4741_v15 = vmax.f32 %v4733_v43, 0.0  ;;  %v4719_v6 = vadd.f32 %v4680_v38, %v4506_v18 }
 0x2b1   : > { %v4476_v63 = vpop.f32.mrf.mxu1 }
 0x2b2   : > { %v4689_v53 = vpop.f32.mrf.mxu0  ;;  %4749 = vst.msk [vmem:[%s7445_s14 + $0x18] sm:$0xff] %vm2604_vm2, %v4741_v15  ;;  %v4734_v17 = vadd.f32 %v7434_v49, %v4719_v6  ;;  %v4507_v7 = vadd.f32 %v4476_v63, %v4296_v37 }
 0x2b3   : > { %v6057_v10 = vpop.f32.mrf.mxu1 }
 0x2b4   : > { %v6083_v11 = vpop.f32.mrf.mxu0  ;;  %v4742_v8 = vmax.f32 %v4734_v17, 0.0  ;;  %v4720_v19 = vadd.f32 %v4689_v53, %v4507_v7 }
 0x2b5   : > { %v4485_v57 = vpop.f32.mrf.mxu1 }
 0x2b6   : > { %v4698_v52 = vpop.f32.mrf.mxu0  ;;  %4750 = vst.msk [vmem:[%s7445_s14 + $0x20] sm:$0xff] %vm2604_vm2, %v4742_v8  ;;  %v4735_v12 = vadd.f32 %v7434_v49, %v4720_v19  ;;  %v4508_v14 = vadd.f32 %v4485_v57, %v4297_v41 }
 0x2b7   : > { %v6060_v51 = vpop.f32.mrf.mxu1 }
 0x2b8   : > { %v6086_v48 = vpop.f32.mrf.mxu0  ;;  %v4743_v40 = vmax.f32 %v4735_v12, 0.0  ;;  %v4721_v22 = vadd.f32 %v4698_v52, %v4508_v14 }
 0x2b9   : > { %v4494_v30 = vpop.f32.mrf.mxu1 }
 0x2ba   : > { %4751 = vst.msk [vmem:[%s7445_s14 + $0x28] sm:$0xff] %vm2604_vm2, %v4743_v40  ;;  %v4736_v13 = vadd.f32 %v7434_v49, %v4721_v22  ;;  %v4509_v54 = vadd.f32 %v4494_v30, %v4298_v3  ;;  %v4707_v0 = vpop.f32.mrf.mxu0 }
 0x2bc   : > { %v4744_v45 = vmax.f32 %v4736_v13, 0.0  ;;  %v4722_v62 = vadd.f32 %v4707_v0, %v4509_v54 }
 0x2be   : > { %4752 = vst.msk [vmem:[%s7445_s14 + $0x30] sm:$0xff] %vm2604_vm2, %v4744_v45  ;;  %v4737_v31 = vadd.f32 %v7434_v49, %v4722_v62 }
 0x2c0   : > { %v4745_v55 = vmax.f32 %v4737_v31, 0.0 }
 0x2c2   : > { %4753 = vst.msk [vmem:[%s7445_s14 + $0x38] sm:$0xff] %vm2604_vm2, %v4745_v55 }
 0x2c3   : > { %6145 = shalt.err (!%p6142_p3)
}
 0x2c4   : > { %s6146_s10 = scalar_lea.hbm %s7487_s20, 1024  ;;  %s6150_s12 = scalar_lea.hbm %s7541_s6, 2048 }
 0x2c5   : > { %p6147_p4 = scmp.ne.s32.totalorder %s7487_s20, %s6146_s10  ;;  %p6151_p9 = scmp.lt.s32.totalorder %s7487_s20, %s7541_s6 }
 0x2c6   : > { %p6152_p10 = scmp.lt.s32.totalorder %s6150_s12, %s6146_s10 }
 0x2c7   : > { %p6148_p7 = pnand %p6147_p4, %p6271_p5 }
 0x2c8   : > { %p6153_p11 = por %p6152_p10, %p6151_p9 }
 0x2c9   : > { %p6149_p8 = pneg %p6148_p7 }
 0x2cb   : > { %p6154_p12 = pnand %p6153_p11, %p6149_p8 }
 0x2cd   : > { %6157 = shalt.err (!%p6154_p12)
}
 0x2ce   : > { %s6196_s15 = smov 128   ;;  %s6197_s17 = smov 8  }
 0x2cf   : > { %6090 = dma.vmem_to_hbm [thread:$0]  (%p6271_p5), %s7489_s16, 1024, %s7487_s20, %s7495_s25, %s6196_s15, %s6196_s15, %s6197_s17  }
 0x2d0 PF: > { %p6096_p13 = scmp.ge.s32.totalorder %s6192_s24, 2  ;;  %s4783_s18 = sand.u32 1, %s6180_s21  }
 0x2d1   : > { %s4784_s26 = scalar_lea.sflag [#allocation4], %s4783_s18 }
 0x2d2   : > { %p6093_p0 = pnand %p6096_p13, %p6275_p6 }
 0x2d4   : > { %p6094_p1 = pneg %p6093_p0 }
 0x2d6   : > { %6175 = dma.done.wait (%p6094_p1), %s4784_s26, 1024  }
 0x2d7   : > { %6177 = vsyncadd (%p6094_p1), %s4784_s26, 4294966272  ;;  %p16_p2 = scmp.ge.s32.totalorder %s6258_s27, 4   ;;  %s7544_s21 = smov %s6184_s22 }
 0x2d8   : > { %s7545_s22 = smov %s6188_s23  ;;  %s7546_s23 = smov %s6269_s30 }
 0x2d9   : > { %s7547_s24 = smov %s6258_s27  ;;  %18 = sbr.rel (!%p16_p2) target bundleno = 3 (0x3), region = 98 }
 0x2de   :  { %4789 = vsyncpa [#allocation4], 1 }
 0x2df   :  { %4791 = vsyncpa [#allocation4 + $0x1], 1 }

</bundles_post_ra>
